<compile_context>
chip_gen: v7x
topology: tpu7x:2x2x1
jax: 0.10.0
libtpu: 0.0.40
codegen_flags: <defaults>
</compile_context>

<pallas_src>
import functools

import jax
import jax.numpy as jnp
from jax.experimental import pallas as pl
from jax.experimental.pallas import tpu as pltpu


# ----------------------------------------------------------------------------
# Fused kernel builder: wavefront LSTM stack + attention + MLP in one call.
# ----------------------------------------------------------------------------
def _build_fused_kernel(T, Bp, H, n_lstm, n_mlp, matmul_dtype):
    approx_recip = matmul_dtype == jnp.bfloat16
    L = n_lstm
    H4 = 4 * H
    PAIR = 2 * H          # per-layer column block in the fused block-diag matmul
    K = PAIR * L          # fused contraction width (L=2, H=32 -> 128)

    def kernel(*refs):
        # refs: x, L*(wih, whh, b), att_w, att_b, n_mlp*(w, b), out, seq_scratch
        x_ref = refs[0]
        lstm_refs = refs[1:1 + 3 * L]
        att_w_ref = refs[1 + 3 * L]
        att_b_ref = refs[2 + 3 * L]
        mlp_refs = refs[3 + 3 * L:3 + 3 * L + 2 * n_mlp]
        out_ref = refs[3 + 3 * L + 2 * n_mlp]
        seq_ref = refs[-1]                          # VMEM scratch (T*Bp, H) f32

        md = matmul_dtype
        f32 = jnp.float32

        def mm(a, b):
            return jnp.dot(a.astype(md), b.astype(md), preferred_element_type=f32)

        # ----- hoisted per-lane gate constants (single-tanh sigmoid trick) -----
        # sigmoid(x) = 0.5*tanh(0.5*x) + 0.5 for i/f/o lanes; plain tanh for g.
        ones_h = jnp.ones((1, H), f32)
        scale_row = jnp.concatenate(
            [0.5 * ones_h, 0.5 * ones_h, 1.0 * ones_h, 0.5 * ones_h], axis=1)
        beta_row = jnp.concatenate(
            [0.5 * ones_h, 0.5 * ones_h, 0.0 * ones_h, 0.5 * ones_h], axis=1)
        scale_full = jnp.broadcast_to(scale_row, (L * Bp, H4))   # hoisted broadcasts
        beta_full = jnp.broadcast_to(beta_row, (L * Bp, H4))
        scale_bp = scale_full[:Bp, :]
        beta_bp = beta_full[:Bp, :]

        def act_fn(pre, sc, be):
            # ONE transcendental pass over the whole slab (alpha == scale).
            return sc * jnp.tanh(pre * sc) + be

        zeros_h = jnp.zeros((Bp, H), f32)
        _zcols = {}

        def zcols(n):
            if n not in _zcols:
                _zcols[n] = jnp.zeros((Bp, n), f32)
            return _zcols[n]

        # ----- weights: build the fused RHS once (single bf16 cast, hoisted) -----
        # Per-layer 2H-row block: [ wih_l (zeros for layer 0: input proj hoisted) ;
        #                           whh_l ]
        rhs_blocks = []
        b_bcast = []
        for l in range(L):
            wih = lstm_refs[3 * l][...]
            whh = lstm_refs[3 * l + 1][...]
            bias = lstm_refs[3 * l + 2][...]
            rhs_blocks.append(jnp.zeros((H, H4), f32) if l == 0 else wih)
            rhs_blocks.append(whh)
            b_bcast.append(jnp.broadcast_to(bias, (Bp, H4)))     # hoisted broadcasts
        rhs_full = jnp.concatenate(rhs_blocks, axis=0).astype(md)   # (K, 4H)
        if L > 1:
            b_rest = jnp.concatenate(b_bcast[1:], axis=0)        # ((L-1)*Bp, 4H)

        # ----- hoisted layer-0 input projection: ONE big matmul (bias folded) -----
        d_in = x_ref.shape[-1]
        x_flat = x_ref[...].reshape(T * Bp, d_in)
        gx0 = mm(x_flat, lstm_refs[0][...]) + lstm_refs[2][...]  # (T*Bp, 4H) f32

        # ----- wavefront recurrence over (time, layer) -----
        h = [jnp.zeros((Bp, H), f32) for _ in range(L)]          # f32 recurrent state
        c = [jnp.zeros((Bp, H), f32) for _ in range(L)]

        def cell_update(a_slab, l):
            i_g = a_slab[:, 0 * H:1 * H]
            f_g = a_slab[:, 1 * H:2 * H]
            g_g = a_slab[:, 2 * H:3 * H]
            o_g = a_slab[:, 3 * H:4 * H]
            c[l] = f_g * c[l] + i_g * g_g
            return o_g

        for w in range(T + L - 1):
            active = [l for l in range(L) if 0 <= w - l <= T - 1]
            h_prev = list(h)                    # snapshot: all reads this step

            if len(active) == L:
                # Fused step: block-diagonal LHS, ONE MXU call for all layers.
                rows = []
                for l in range(L):
                    feed = zeros_h if l == 0 else h_prev[l - 1]
                    pieces = []
                    if l > 0:
                        pieces.append(zcols(PAIR * l))
                    pieces.append(jnp.concatenate([feed, h_prev[l]], axis=1))
                    if l < L - 1:
                        pieces.append(zcols(PAIR * (L - 1 - l)))
                    rows.append(pieces[0] if len(pieces) == 1
                                else jnp.concatenate(pieces, axis=1))
                lhs = rows[0] if L == 1 else jnp.concatenate(rows, axis=0)  # (L*Bp, K)
                # one f32->bf16 cast per step for the whole assembled LHS
                gates = jnp.dot(lhs.astype(md), rhs_full, preferred_element_type=f32)
                gx_t = gx0[w * Bp:(w + 1) * Bp, :]               # layer 0 at t = w
                addend = gx_t if L == 1 else jnp.concatenate([gx_t, b_rest], axis=0)
                act = act_fn(gates + addend, scale_full, beta_full)

                o_list = [cell_update(act[l * Bp:(l + 1) * Bp, :], l)
                          for l in range(L)]
                c_all = c[0] if L == 1 else jnp.concatenate(c, axis=0)
                tc = jnp.tanh(c_all)                             # one fused EUP pass
                for l in range(L):
                    h_new = o_list[l] * tc[l * Bp:(l + 1) * Bp, :]
                    h[l] = h_new
                    if l == L - 1:                               # only last layer kept
                        t_last = w - (L - 1)
                        seq_ref[pl.ds(t_last * Bp, Bp), :] = h_new
            else:
                # Boundary wavefront steps (pipeline fill / drain).
                for l in active:
                    t = w - l
                    if l == 0:
                        pre = gx0[w * Bp:(w + 1) * Bp, :]
                        if t > 0:
                            whh0 = rhs_full[H:2 * H, :]
                            pre = pre + jnp.dot(h_prev[0].astype(md), whh0,
                                                preferred_element_type=f32)
                    else:
                        lhs_l = jnp.concatenate([h_prev[l - 1], h_prev[l]], axis=1)
                        rhs_l = rhs_full[PAIR * l:PAIR * (l + 1), :]
                        pre = jnp.dot(lhs_l.astype(md), rhs_l,
                                      preferred_element_type=f32) + b_bcast[l]
                    a_slab = act_fn(pre, scale_bp, beta_bp)
                    o_g = cell_update(a_slab, l)
                    h_new = o_g * jnp.tanh(c[l])
                    h[l] = h_new
                    if l == L - 1:
                        seq_ref[pl.ds(t * Bp, Bp), :] = h_new

        # --------------------------------------------------------------
        # Attention over the step (time) dimension.
        #   e = tanh(x . w + b_step) ; a = exp(e)/(sum_t + 1e-10)
        #   h_att = sum_t a[t] * x[t]
        # --------------------------------------------------------------
        seq3 = seq_ref[...].reshape(T, Bp, H)
        w_att = att_w_ref[...].reshape(1, 1, H)
        b_att = att_b_ref[...].reshape(T, 1, 1)
        e = jnp.sum(seq3 * w_att, axis=-1, keepdims=True)        # (T, Bp, 1)
        e = jnp.tanh(e + b_att)
        a = jnp.exp(e)
        denom = jnp.sum(a, axis=0, keepdims=True) + 1e-10
        a = a * pl.reciprocal(denom, approx=approx_recip)
        h_att = jnp.sum(seq3 * a, axis=0)                        # (Bp, H)

        # --------------------------------------------------------------
        # MLP head (Dropout = identity in eval mode).  Final Linear is
        # zero-padded to 128 output lanes -> lane-dense store.
        # --------------------------------------------------------------
        hm = h_att
        for li in range(n_mlp):
            wgt = mlp_refs[2 * li][...]
            bb = mlp_refs[2 * li + 1][...]
            hm = mm(hm, wgt) + bb
            if li < n_mlp - 1:
                hm = jnp.maximum(hm, 0.0)
        out_ref[...] = hm                                        # (Bp, out_pad)

    return kernel


# ----------------------------------------------------------------------------
# Wrapper (glue only): transpose to time-major, pad batch & out lanes, one call.
# ----------------------------------------------------------------------------
def lstm_mlp_att_forward(x, lstm_params, att_w, att_b, mlp_params,
                         ntargets=1, precise=False):
    """x: (B, T, D) batch-first like the PyTorch module. Returns (B, ntargets)."""
    B, T, _ = x.shape
    H = lstm_params[0][1].shape[0]
    n_lstm = len(lstm_params)
    n_mlp = len(mlp_params)

    # Pad batch to a multiple of 8 for sublane occupancy.
    Bp = max(8, ((B + 7) // 8) * 8)
    x_tm = jnp.transpose(x, (1, 0, 2))                  # (T, B, D) time-major
    if Bp != B:
        x_tm = jnp.pad(x_tm, ((0, 0), (0, Bp - B), (0, 0)))

    # Lane-dense output: pad the final Linear to a multiple of 128 output lanes.
    out_pad = ((ntargets + 127) // 128) * 128
    w_last, b_last = mlp_params[-1]
    pad_n = out_pad - w_last.shape[1]
    mlp_padded = list(mlp_params[:-1]) + [
        (jnp.pad(w_last, ((0, 0), (0, pad_n))),
         jnp.pad(b_last, ((0, 0), (0, pad_n))))]

    matmul_dtype = jnp.float32 if precise else jnp.bfloat16
    kernel = _build_fused_kernel(T, Bp, H, n_lstm, n_mlp, matmul_dtype)

    flat = [x_tm]
    for (wih_t, whh_t, b) in lstm_params:
        flat += [wih_t, whh_t, b]
    flat += [att_w, att_b]
    for (w, b) in mlp_padded:
        flat += [w, b]

    vmem_spec = pl.BlockSpec(memory_space=pltpu.MemorySpace.VMEM)
    out = pl.pallas_call(
        kernel,
        out_shape=jax.ShapeDtypeStruct((Bp, out_pad), jnp.float32),
        in_specs=[vmem_spec] * len(flat),
        out_specs=vmem_spec,
        scratch_shapes=[pltpu.VMEM((T * Bp, H), jnp.float32)],
    )(*flat)
    return out[:B, :ntargets]


# ----------------------------------------------------------------------------
# Pure-JAX reference for correctness checks.
# ----------------------------------------------------------------------------
def ref_forward(x, lstm_params, att_w, att_b, mlp_params):
    B, T, _ = x.shape
    out = x
    for (wih_t, whh_t, b) in lstm_params:
        H = whh_t.shape[0]

        def step(carry, xt, wih_t=wih_t, whh_t=whh_t, b=b, H=H):
            h, c = carry
            gates = xt @ wih_t + h @ whh_t + b[0]
            i = jax.nn.sigmoid(gates[:, :H])
            f = jax.nn.sigmoid(gates[:, H:2 * H])
            g = jnp.tanh(gates[:, 2 * H:3 * H])
            o = jax.nn.sigmoid(gates[:, 3 * H:])
            c = f * c + i * g
            h = o * jnp.tanh(c)
            return (h, c), h

        h0 = jnp.zeros((B, H), jnp.float32)
        c0 = jnp.zeros((B, H), jnp.float32)
        _, ys = jax.lax.scan(step, (h0, c0), jnp.transpose(out, (1, 0, 2)))
        out = jnp.transpose(ys, (1, 0, 2))              # (B, T, H)

    e = jnp.tanh(jnp.einsum('bth,h->bt', out, att_w[0]) + att_b[:, 0][None, :])
    a = jnp.exp(e)
    a = a / (jnp.sum(a, axis=1, keepdims=True) + 1e-10)
    h = jnp.sum(out * a[:, :, None], axis=1)

    n = len(mlp_params)
    for li, (w, bb) in enumerate(mlp_params):
        h = h @ w + bb
        if li < n - 1:
            h = jnp.maximum(h, 0.0)
    return h


# ----------------------------------------------------------------------------
# Deterministic parameter construction + run.
# ----------------------------------------------------------------------------
def _uniform(key, shape, scale=0.1):
    return jax.random.uniform(key, shape, jnp.float32, -scale, scale)


if __name__ == "__main__":
    # Small hyperparameters, consistent with the PyTorch constructor.
    B = 2                    # batch
    T = 6                    # sequence_length (module default)
    INPUT_SIZE = 32          # input_size
    LSTM_H = 32              # lstm_hidden_size
    LSTM_LAYERS = 2          # lstm_layers
    MLP_H = 32               # hidden_size
    MLP_EXTRA = 1            # num_layers (extra hidden Linear blocks)
    NTARGETS = 1

    key = jax.random.PRNGKey(0)
    keys = iter(jax.random.split(key, 64))

    # LSTM parameters (transposed for x @ W).
    lstm_params = []
    for layer in range(LSTM_LAYERS):
        d_in = INPUT_SIZE if layer == 0 else LSTM_H
        wih_t = _uniform(next(keys), (d_in, 4 * LSTM_H))
        whh_t = _uniform(next(keys), (LSTM_H, 4 * LSTM_H))
        b = _uniform(next(keys), (1, 4 * LSTM_H))       # b_ih + b_hh combined
        lstm_params.append((wih_t, whh_t, b))

    # Attention: torch weight (H, 1) -> stored (1, H); bias (step_dim,) -> (T, 1).
    att_w = _uniform(next(keys), (1, LSTM_H), scale=0.4)
    att_b = _uniform(next(keys), (T, 1), scale=0.1)

    # MLP: Linear(LSTM_H, MLP_H), MLP_EXTRA x Linear(MLP_H, MLP_H), Linear(MLP_H, NTARGETS)
    mlp_params = []
    dims = [(LSTM_H, MLP_H)] + [(MLP_H, MLP_H)] * MLP_EXTRA + [(MLP_H, NTARGETS)]
    for (din, dout) in dims:
        w = _uniform(next(keys), (din, dout))
        bb = _uniform(next(keys), (1, dout))
        mlp_params.append((w, bb))

    # Input: batch_first (B, T, input_size), like the PyTorch module.
    x = jax.random.normal(next(keys), (B, T, INPUT_SIZE), jnp.float32)

    # Fast path (bf16 MXU operands, approx reciprocal) — the default.
    fwd_fast = jax.jit(functools.partial(
        lstm_mlp_att_forward, ntargets=NTARGETS, precise=False))
    out_fast = jax.block_until_ready(
        fwd_fast(x, lstm_params, att_w, att_b, mlp_params))

    # Precise path (all-f32) — used for a tight correctness check.
    fwd_precise = jax.jit(functools.partial(
        lstm_mlp_att_forward, ntargets=NTARGETS, precise=True))
    out_precise = jax.block_until_ready(
        fwd_precise(x, lstm_params, att_w, att_b, mlp_params))

    with jax.default_matmul_precision("highest"):
        ref = ref_forward(x, lstm_params, att_w, att_b, mlp_params)
    ref = jax.block_until_ready(ref)

    assert out_fast.shape == (B, NTARGETS), out_fast.shape
    assert out_precise.shape == (B, NTARGETS), out_precise.shape
    assert jnp.allclose(out_precise, ref, atol=5e-4, rtol=5e-4), (out_precise, ref)
    assert jnp.allclose(out_fast, ref, atol=3e-2, rtol=3e-2), (out_fast, ref)

    print("KERNEL_OK")
</pallas_src>

<mosaic_0001>
module attributes {stable_mosaic.version = 11 : i64} {
  func.func @kernel(%arg0: memref<6x8x32xf32, #tpu.memory_space<vmem>>, %arg1: memref<32x128xf32, #tpu.memory_space<vmem>>, %arg2: memref<32x128xf32, #tpu.memory_space<vmem>>, %arg3: memref<1x128xf32, #tpu.memory_space<vmem>>, %arg4: memref<32x128xf32, #tpu.memory_space<vmem>>, %arg5: memref<32x128xf32, #tpu.memory_space<vmem>>, %arg6: memref<1x128xf32, #tpu.memory_space<vmem>>, %arg7: memref<1x32xf32, #tpu.memory_space<vmem>>, %arg8: memref<6x1xf32, #tpu.memory_space<vmem>>, %arg9: memref<32x32xf32, #tpu.memory_space<vmem>>, %arg10: memref<1x32xf32, #tpu.memory_space<vmem>>, %arg11: memref<32x32xf32, #tpu.memory_space<vmem>>, %arg12: memref<1x32xf32, #tpu.memory_space<vmem>>, %arg13: memref<32x128xf32, #tpu.memory_space<vmem>>, %arg14: memref<1x128xf32, #tpu.memory_space<vmem>>, %arg15: memref<8x128xf32, #tpu.memory_space<vmem>>, %arg16: memref<48x32xf32, #tpu.memory_space<vmem>>) attributes {dimension_semantics = [], scalar_prefetch = 0 : i64, scratch_operands = 1 : i64, tpu.core_type = #tpu.core_type<tc>} {
    %cst = arith.constant 1.000000e+00 : f32
    %0 = vector.broadcast %cst : f32 to vector<1x32xf32>
    %cst_0 = arith.constant 5.000000e-01 : f32
    %1 = vector.broadcast %cst_0 : f32 to vector<1x32xf32>
    %2 = arith.mulf %1, %0 : vector<1x32xf32>
    %cst_1 = arith.constant 5.000000e-01 : f32
    %3 = vector.broadcast %cst_1 : f32 to vector<1x32xf32>
    %4 = arith.mulf %3, %0 : vector<1x32xf32>
    %cst_2 = arith.constant 1.000000e+00 : f32
    %5 = vector.broadcast %cst_2 : f32 to vector<1x32xf32>
    %6 = arith.mulf %5, %0 : vector<1x32xf32>
    %cst_3 = arith.constant 5.000000e-01 : f32
    %7 = vector.broadcast %cst_3 : f32 to vector<1x32xf32>
    %8 = arith.mulf %7, %0 : vector<1x32xf32>
    %9 = tpu.concatenate %2, %4, %6, %8 in 1 : vector<1x32xf32>, vector<1x32xf32>, vector<1x32xf32>, vector<1x32xf32> -> vector<1x128xf32>
    %cst_4 = arith.constant 5.000000e-01 : f32
    %10 = vector.broadcast %cst_4 : f32 to vector<1x32xf32>
    %11 = arith.mulf %10, %0 : vector<1x32xf32>
    %cst_5 = arith.constant 5.000000e-01 : f32
    %12 = vector.broadcast %cst_5 : f32 to vector<1x32xf32>
    %13 = arith.mulf %12, %0 : vector<1x32xf32>
    %cst_6 = arith.constant 0.000000e+00 : f32
    %14 = vector.broadcast %cst_6 : f32 to vector<1x32xf32>
    %15 = arith.mulf %14, %0 : vector<1x32xf32>
    %cst_7 = arith.constant 5.000000e-01 : f32
    %16 = vector.broadcast %cst_7 : f32 to vector<1x32xf32>
    %17 = arith.mulf %16, %0 : vector<1x32xf32>
    %18 = tpu.concatenate %11, %13, %15, %17 in 1 : vector<1x32xf32>, vector<1x32xf32>, vector<1x32xf32>, vector<1x32xf32> -> vector<1x128xf32>
    %19 = vector.shape_cast %9 : vector<1x128xf32> to vector<1x128xf32>
    %20 = vector.broadcast %19 : vector<1x128xf32> to vector<16x128xf32>
    %21 = vector.shape_cast %18 : vector<1x128xf32> to vector<1x128xf32>
    %22 = vector.broadcast %21 : vector<1x128xf32> to vector<16x128xf32>
    %23 = vector.extract_strided_slice %20 {offsets = [0, 0], sizes = [8, 128], strides = [1, 1]} : vector<16x128xf32> to vector<8x128xf32>
    %24 = vector.extract_strided_slice %22 {offsets = [0, 0], sizes = [8, 128], strides = [1, 1]} : vector<16x128xf32> to vector<8x128xf32>
    %cst_8 = arith.constant 0.000000e+00 : f32
    %25 = vector.broadcast %cst_8 : f32 to vector<8x32xf32>
    %c0 = arith.constant 0 : index
    %c0_9 = arith.constant 0 : index
    %26 = vector.load %arg2[%c0, %c0_9] : memref<32x128xf32, #tpu.memory_space<vmem>>, vector<32x128xf32>
    %cst_10 = arith.constant 0.000000e+00 : f32
    %27 = vector.broadcast %cst_10 : f32 to vector<32x128xf32>
    %c0_11 = arith.constant 0 : index
    %c0_12 = arith.constant 0 : index
    %28 = vector.load %arg4[%c0_11, %c0_12] : memref<32x128xf32, #tpu.memory_space<vmem>>, vector<32x128xf32>
    %c0_13 = arith.constant 0 : index
    %c0_14 = arith.constant 0 : index
    %29 = vector.load %arg5[%c0_13, %c0_14] : memref<32x128xf32, #tpu.memory_space<vmem>>, vector<32x128xf32>
    %c0_15 = arith.constant 0 : index
    %c0_16 = arith.constant 0 : index
    %30 = vector.load %arg6[%c0_15, %c0_16] : memref<1x128xf32, #tpu.memory_space<vmem>>, vector<1x128xf32>
    %31 = vector.shape_cast %30 : vector<1x128xf32> to vector<1x128xf32>
    %32 = vector.broadcast %31 : vector<1x128xf32> to vector<8x128xf32>
    %33 = tpu.concatenate %27, %26, %28, %29 in 0 : vector<32x128xf32>, vector<32x128xf32>, vector<32x128xf32>, vector<32x128xf32> -> vector<128x128xf32>
    %34 = arith.truncf %33 : vector<128x128xf32> to vector<128x128xbf16>
    %c0_17 = arith.constant 0 : index
    %c0_18 = arith.constant 0 : index
    %c0_19 = arith.constant 0 : index
    %35 = vector.load %arg0[%c0_17, %c0_18, %c0_19] : memref<6x8x32xf32, #tpu.memory_space<vmem>>, vector<6x8x32xf32>
    %36 = vector.shape_cast %35 : vector<6x8x32xf32> to vector<48x32xf32>
    %c0_20 = arith.constant 0 : index
    %c0_21 = arith.constant 0 : index
    %37 = vector.load %arg1[%c0_20, %c0_21] : memref<32x128xf32, #tpu.memory_space<vmem>>, vector<32x128xf32>
    %38 = arith.truncf %36 : vector<48x32xf32> to vector<48x32xbf16>
    %39 = arith.truncf %37 : vector<32x128xf32> to vector<32x128xbf16>
    %cst_22 = arith.constant dense<0.000000e+00> : vector<48x128xf32>
    %40 = tpu.matmul %38, %39, %cst_22 {dimension_numbers = #tpu.dot_dimension_numbers<[1], [0], [0], [1], [0, 0, 1, 1], [], []>} : vector<48x32xbf16>, vector<32x128xbf16>, vector<48x128xf32> -> vector<48x128xf32>
    %c0_23 = arith.constant 0 : index
    %c0_24 = arith.constant 0 : index
    %41 = vector.load %arg3[%c0_23, %c0_24] : memref<1x128xf32, #tpu.memory_space<vmem>>, vector<1x128xf32>
    %42 = vector.broadcast %41 : vector<1x128xf32> to vector<48x128xf32>
    %43 = arith.addf %40, %42 : vector<48x128xf32>
    %cst_25 = arith.constant 0.000000e+00 : f32
    %44 = vector.broadcast %cst_25 : f32 to vector<8x32xf32>
    %cst_26 = arith.constant 0.000000e+00 : f32
    %45 = vector.broadcast %cst_26 : f32 to vector<8x32xf32>
    %cst_27 = arith.constant 0.000000e+00 : f32
    %46 = vector.broadcast %cst_27 : f32 to vector<8x32xf32>
    %47 = vector.extract_strided_slice %43 {offsets = [0, 0], sizes = [8, 128], strides = [1, 1]} : vector<48x128xf32> to vector<8x128xf32>
    %48 = arith.mulf %47, %23 : vector<8x128xf32>
    %49 = math.tanh %48 : vector<8x128xf32>
    %50 = arith.mulf %23, %49 : vector<8x128xf32>
    %51 = arith.addf %50, %24 : vector<8x128xf32>
    %52 = vector.extract_strided_slice %51 {offsets = [0, 0], sizes = [8, 32], strides = [1, 1]} : vector<8x128xf32> to vector<8x32xf32>
    %53 = vector.extract_strided_slice %51 {offsets = [0, 32], sizes = [8, 32], strides = [1, 1]} : vector<8x128xf32> to vector<8x32xf32>
    %54 = vector.extract_strided_slice %51 {offsets = [0, 64], sizes = [8, 32], strides = [1, 1]} : vector<8x128xf32> to vector<8x32xf32>
    %55 = vector.extract_strided_slice %51 {offsets = [0, 96], sizes = [8, 32], strides = [1, 1]} : vector<8x128xf32> to vector<8x32xf32>
    %56 = arith.mulf %53, %45 : vector<8x32xf32>
    %57 = arith.mulf %52, %54 : vector<8x32xf32>
    %58 = arith.addf %56, %57 : vector<8x32xf32>
    %59 = math.tanh %58 : vector<8x32xf32>
    %60 = arith.mulf %55, %59 : vector<8x32xf32>
    %61 = tpu.concatenate %25, %60 in 1 : vector<8x32xf32>, vector<8x32xf32> -> vector<8x64xf32>
    %cst_28 = arith.constant 0.000000e+00 : f32
    %62 = vector.broadcast %cst_28 : f32 to vector<8x64xf32>
    %63 = tpu.concatenate %61, %62 in 1 : vector<8x64xf32>, vector<8x64xf32> -> vector<8x128xf32>
    %64 = tpu.concatenate %60, %44 in 1 : vector<8x32xf32>, vector<8x32xf32> -> vector<8x64xf32>
    %65 = tpu.concatenate %62, %64 in 1 : vector<8x64xf32>, vector<8x64xf32> -> vector<8x128xf32>
    %66 = tpu.concatenate %63, %65 in 0 : vector<8x128xf32>, vector<8x128xf32> -> vector<16x128xf32>
    %67 = arith.truncf %66 : vector<16x128xf32> to vector<16x128xbf16>
    %cst_29 = arith.constant dense<0.000000e+00> : vector<16x128xf32>
    %68 = tpu.matmul %67, %34, %cst_29 {dimension_numbers = #tpu.dot_dimension_numbers<[1], [0], [0], [1], [0, 0, 1, 1], [], []>} : vector<16x128xbf16>, vector<128x128xbf16>, vector<16x128xf32> -> vector<16x128xf32>
    %69 = vector.extract_strided_slice %43 {offsets = [8, 0], sizes = [8, 128], strides = [1, 1]} : vector<48x128xf32> to vector<8x128xf32>
    %70 = tpu.concatenate %69, %32 in 0 : vector<8x128xf32>, vector<8x128xf32> -> vector<16x128xf32>
    %71 = arith.addf %68, %70 : vector<16x128xf32>
    %72 = arith.mulf %71, %20 : vector<16x128xf32>
    %73 = math.tanh %72 : vector<16x128xf32>
    %74 = arith.mulf %20, %73 : vector<16x128xf32>
    %75 = arith.addf %74, %22 : vector<16x128xf32>
    %76 = vector.extract_strided_slice %75 {offsets = [0, 0], sizes = [8, 128], strides = [1, 1]} : vector<16x128xf32> to vector<8x128xf32>
    %77 = vector.extract_strided_slice %76 {offsets = [0, 0], sizes = [8, 32], strides = [1, 1]} : vector<8x128xf32> to vector<8x32xf32>
    %78 = vector.extract_strided_slice %76 {offsets = [0, 32], sizes = [8, 32], strides = [1, 1]} : vector<8x128xf32> to vector<8x32xf32>
    %79 = vector.extract_strided_slice %76 {offsets = [0, 64], sizes = [8, 32], strides = [1, 1]} : vector<8x128xf32> to vector<8x32xf32>
    %80 = vector.extract_strided_slice %76 {offsets = [0, 96], sizes = [8, 32], strides = [1, 1]} : vector<8x128xf32> to vector<8x32xf32>
    %81 = arith.mulf %78, %58 : vector<8x32xf32>
    %82 = arith.mulf %77, %79 : vector<8x32xf32>
    %83 = arith.addf %81, %82 : vector<8x32xf32>
    %84 = vector.extract_strided_slice %75 {offsets = [8, 0], sizes = [8, 128], strides = [1, 1]} : vector<16x128xf32> to vector<8x128xf32>
    %85 = vector.extract_strided_slice %84 {offsets = [0, 0], sizes = [8, 32], strides = [1, 1]} : vector<8x128xf32> to vector<8x32xf32>
    %86 = vector.extract_strided_slice %84 {offsets = [0, 32], sizes = [8, 32], strides = [1, 1]} : vector<8x128xf32> to vector<8x32xf32>
    %87 = vector.extract_strided_slice %84 {offsets = [0, 64], sizes = [8, 32], strides = [1, 1]} : vector<8x128xf32> to vector<8x32xf32>
    %88 = vector.extract_strided_slice %84 {offsets = [0, 96], sizes = [8, 32], strides = [1, 1]} : vector<8x128xf32> to vector<8x32xf32>
    %89 = arith.mulf %86, %46 : vector<8x32xf32>
    %90 = arith.mulf %85, %87 : vector<8x32xf32>
    %91 = arith.addf %89, %90 : vector<8x32xf32>
    %92 = tpu.concatenate %83, %91 in 0 : vector<8x32xf32>, vector<8x32xf32> -> vector<16x32xf32>
    %93 = math.tanh %92 : vector<16x32xf32>
    %94 = vector.extract_strided_slice %93 {offsets = [0, 0], sizes = [8, 32], strides = [1, 1]} : vector<16x32xf32> to vector<8x32xf32>
    %95 = arith.mulf %80, %94 : vector<8x32xf32>
    %96 = vector.extract_strided_slice %93 {offsets = [8, 0], sizes = [8, 32], strides = [1, 1]} : vector<16x32xf32> to vector<8x32xf32>
    %97 = arith.mulf %88, %96 : vector<8x32xf32>
    %c0_30 = arith.constant 0 : index
    %c0_31 = arith.constant 0 : index
    %98 = vector.load %arg16[%c0_30, %c0_31] : memref<48x32xf32, #tpu.memory_space<vmem>>, vector<8x32xf32>
    tpu.vector_store %arg16[%c0_30, %c0_31], %97 {strides = array<i32>} : memref<48x32xf32, #tpu.memory_space<vmem>>, vector<8x32xf32>,
    %99 = tpu.concatenate %25, %95 in 1 : vector<8x32xf32>, vector<8x32xf32> -> vector<8x64xf32>
    %100 = tpu.concatenate %99, %62 in 1 : vector<8x64xf32>, vector<8x64xf32> -> vector<8x128xf32>
    %101 = tpu.concatenate %95, %97 in 1 : vector<8x32xf32>, vector<8x32xf32> -> vector<8x64xf32>
    %102 = tpu.concatenate %62, %101 in 1 : vector<8x64xf32>, vector<8x64xf32> -> vector<8x128xf32>
    %103 = tpu.concatenate %100, %102 in 0 : vector<8x128xf32>, vector<8x128xf32> -> vector<16x128xf32>
    %104 = arith.truncf %103 : vector<16x128xf32> to vector<16x128xbf16>
    %cst_32 = arith.constant dense<0.000000e+00> : vector<16x128xf32>
    %105 = tpu.matmul %104, %34, %cst_32 {dimension_numbers = #tpu.dot_dimension_numbers<[1], [0], [0], [1], [0, 0, 1, 1], [], []>} : vector<16x128xbf16>, vector<128x128xbf16>, vector<16x128xf32> -> vector<16x128xf32>
    %106 = vector.extract_strided_slice %43 {offsets = [16, 0], sizes = [8, 128], strides = [1, 1]} : vector<48x128xf32> to vector<8x128xf32>
    %107 = tpu.concatenate %106, %32 in 0 : vector<8x128xf32>, vector<8x128xf32> -> vector<16x128xf32>
    %108 = arith.addf %105, %107 : vector<16x128xf32>
    %109 = arith.mulf %108, %20 : vector<16x128xf32>
    %110 = math.tanh %109 : vector<16x128xf32>
    %111 = arith.mulf %20, %110 : vector<16x128xf32>
    %112 = arith.addf %111, %22 : vector<16x128xf32>
    %113 = vector.extract_strided_slice %112 {offsets = [0, 0], sizes = [8, 128], strides = [1, 1]} : vector<16x128xf32> to vector<8x128xf32>
    %114 = vector.extract_strided_slice %113 {offsets = [0, 0], sizes = [8, 32], strides = [1, 1]} : vector<8x128xf32> to vector<8x32xf32>
    %115 = vector.extract_strided_slice %113 {offsets = [0, 32], sizes = [8, 32], strides = [1, 1]} : vector<8x128xf32> to vector<8x32xf32>
    %116 = vector.extract_strided_slice %113 {offsets = [0, 64], sizes = [8, 32], strides = [1, 1]} : vector<8x128xf32> to vector<8x32xf32>
    %117 = vector.extract_strided_slice %113 {offsets = [0, 96], sizes = [8, 32], strides = [1, 1]} : vector<8x128xf32> to vector<8x32xf32>
    %118 = arith.mulf %115, %83 : vector<8x32xf32>
    %119 = arith.mulf %114, %116 : vector<8x32xf32>
    %120 = arith.addf %118, %119 : vector<8x32xf32>
    %121 = vector.extract_strided_slice %112 {offsets = [8, 0], sizes = [8, 128], strides = [1, 1]} : vector<16x128xf32> to vector<8x128xf32>
    %122 = vector.extract_strided_slice %121 {offsets = [0, 0], sizes = [8, 32], strides = [1, 1]} : vector<8x128xf32> to vector<8x32xf32>
    %123 = vector.extract_strided_slice %121 {offsets = [0, 32], sizes = [8, 32], strides = [1, 1]} : vector<8x128xf32> to vector<8x32xf32>
    %124 = vector.extract_strided_slice %121 {offsets = [0, 64], sizes = [8, 32], strides = [1, 1]} : vector<8x128xf32> to vector<8x32xf32>
    %125 = vector.extract_strided_slice %121 {offsets = [0, 96], sizes = [8, 32], strides = [1, 1]} : vector<8x128xf32> to vector<8x32xf32>
    %126 = arith.mulf %123, %91 : vector<8x32xf32>
    %127 = arith.mulf %122, %124 : vector<8x32xf32>
    %128 = arith.addf %126, %127 : vector<8x32xf32>
    %129 = tpu.concatenate %120, %128 in 0 : vector<8x32xf32>, vector<8x32xf32> -> vector<16x32xf32>
    %130 = math.tanh %129 : vector<16x32xf32>
    %131 = vector.extract_strided_slice %130 {offsets = [0, 0], sizes = [8, 32], strides = [1, 1]} : vector<16x32xf32> to vector<8x32xf32>
    %132 = arith.mulf %117, %131 : vector<8x32xf32>
    %133 = vector.extract_strided_slice %130 {offsets = [8, 0], sizes = [8, 32], strides = [1, 1]} : vector<16x32xf32> to vector<8x32xf32>
    %134 = arith.mulf %125, %133 : vector<8x32xf32>
    %c8 = arith.constant 8 : index
    %c0_33 = arith.constant 0 : index
    %135 = vector.load %arg16[%c8, %c0_33] : memref<48x32xf32, #tpu.memory_space<vmem>>, vector<8x32xf32>
    tpu.vector_store %arg16[%c8, %c0_33], %134 {strides = array<i32>} : memref<48x32xf32, #tpu.memory_space<vmem>>, vector<8x32xf32>,
    %136 = tpu.concatenate %25, %132 in 1 : vector<8x32xf32>, vector<8x32xf32> -> vector<8x64xf32>
    %137 = tpu.concatenate %136, %62 in 1 : vector<8x64xf32>, vector<8x64xf32> -> vector<8x128xf32>
    %138 = tpu.concatenate %132, %134 in 1 : vector<8x32xf32>, vector<8x32xf32> -> vector<8x64xf32>
    %139 = tpu.concatenate %62, %138 in 1 : vector<8x64xf32>, vector<8x64xf32> -> vector<8x128xf32>
    %140 = tpu.concatenate %137, %139 in 0 : vector<8x128xf32>, vector<8x128xf32> -> vector<16x128xf32>
    %141 = arith.truncf %140 : vector<16x128xf32> to vector<16x128xbf16>
    %cst_34 = arith.constant dense<0.000000e+00> : vector<16x128xf32>
    %142 = tpu.matmul %141, %34, %cst_34 {dimension_numbers = #tpu.dot_dimension_numbers<[1], [0], [0], [1], [0, 0, 1, 1], [], []>} : vector<16x128xbf16>, vector<128x128xbf16>, vector<16x128xf32> -> vector<16x128xf32>
    %143 = vector.extract_strided_slice %43 {offsets = [24, 0], sizes = [8, 128], strides = [1, 1]} : vector<48x128xf32> to vector<8x128xf32>
    %144 = tpu.concatenate %143, %32 in 0 : vector<8x128xf32>, vector<8x128xf32> -> vector<16x128xf32>
    %145 = arith.addf %142, %144 : vector<16x128xf32>
    %146 = arith.mulf %145, %20 : vector<16x128xf32>
    %147 = math.tanh %146 : vector<16x128xf32>
    %148 = arith.mulf %20, %147 : vector<16x128xf32>
    %149 = arith.addf %148, %22 : vector<16x128xf32>
    %150 = vector.extract_strided_slice %149 {offsets = [0, 0], sizes = [8, 128], strides = [1, 1]} : vector<16x128xf32> to vector<8x128xf32>
    %151 = vector.extract_strided_slice %150 {offsets = [0, 0], sizes = [8, 32], strides = [1, 1]} : vector<8x128xf32> to vector<8x32xf32>
    %152 = vector.extract_strided_slice %150 {offsets = [0, 32], sizes = [8, 32], strides = [1, 1]} : vector<8x128xf32> to vector<8x32xf32>
    %153 = vector.extract_strided_slice %150 {offsets = [0, 64], sizes = [8, 32], strides = [1, 1]} : vector<8x128xf32> to vector<8x32xf32>
    %154 = vector.extract_strided_slice %150 {offsets = [0, 96], sizes = [8, 32], strides = [1, 1]} : vector<8x128xf32> to vector<8x32xf32>
    %155 = arith.mulf %152, %120 : vector<8x32xf32>
    %156 = arith.mulf %151, %153 : vector<8x32xf32>
    %157 = arith.addf %155, %156 : vector<8x32xf32>
    %158 = vector.extract_strided_slice %149 {offsets = [8, 0], sizes = [8, 128], strides = [1, 1]} : vector<16x128xf32> to vector<8x128xf32>
    %159 = vector.extract_strided_slice %158 {offsets = [0, 0], sizes = [8, 32], strides = [1, 1]} : vector<8x128xf32> to vector<8x32xf32>
    %160 = vector.extract_strided_slice %158 {offsets = [0, 32], sizes = [8, 32], strides = [1, 1]} : vector<8x128xf32> to vector<8x32xf32>
    %161 = vector.extract_strided_slice %158 {offsets = [0, 64], sizes = [8, 32], strides = [1, 1]} : vector<8x128xf32> to vector<8x32xf32>
    %162 = vector.extract_strided_slice %158 {offsets = [0, 96], sizes = [8, 32], strides = [1, 1]} : vector<8x128xf32> to vector<8x32xf32>
    %163 = arith.mulf %160, %128 : vector<8x32xf32>
    %164 = arith.mulf %159, %161 : vector<8x32xf32>
    %165 = arith.addf %163, %164 : vector<8x32xf32>
    %166 = tpu.concatenate %157, %165 in 0 : vector<8x32xf32>, vector<8x32xf32> -> vector<16x32xf32>
    %167 = math.tanh %166 : vector<16x32xf32>
    %168 = vector.extract_strided_slice %167 {offsets = [0, 0], sizes = [8, 32], strides = [1, 1]} : vector<16x32xf32> to vector<8x32xf32>
    %169 = arith.mulf %154, %168 : vector<8x32xf32>
    %170 = vector.extract_strided_slice %167 {offsets = [8, 0], sizes = [8, 32], strides = [1, 1]} : vector<16x32xf32> to vector<8x32xf32>
    %171 = arith.mulf %162, %170 : vector<8x32xf32>
    %c16 = arith.constant 16 : index
    %c0_35 = arith.constant 0 : index
    %172 = vector.load %arg16[%c16, %c0_35] : memref<48x32xf32, #tpu.memory_space<vmem>>, vector<8x32xf32>
    tpu.vector_store %arg16[%c16, %c0_35], %171 {strides = array<i32>} : memref<48x32xf32, #tpu.memory_space<vmem>>, vector<8x32xf32>,
    %173 = tpu.concatenate %25, %169 in 1 : vector<8x32xf32>, vector<8x32xf32> -> vector<8x64xf32>
    %174 = tpu.concatenate %173, %62 in 1 : vector<8x64xf32>, vector<8x64xf32> -> vector<8x128xf32>
    %175 = tpu.concatenate %169, %171 in 1 : vector<8x32xf32>, vector<8x32xf32> -> vector<8x64xf32>
    %176 = tpu.concatenate %62, %175 in 1 : vector<8x64xf32>, vector<8x64xf32> -> vector<8x128xf32>
    %177 = tpu.concatenate %174, %176 in 0 : vector<8x128xf32>, vector<8x128xf32> -> vector<16x128xf32>
    %178 = arith.truncf %177 : vector<16x128xf32> to vector<16x128xbf16>
    %cst_36 = arith.constant dense<0.000000e+00> : vector<16x128xf32>
    %179 = tpu.matmul %178, %34, %cst_36 {dimension_numbers = #tpu.dot_dimension_numbers<[1], [0], [0], [1], [0, 0, 1, 1], [], []>} : vector<16x128xbf16>, vector<128x128xbf16>, vector<16x128xf32> -> vector<16x128xf32>
    %180 = vector.extract_strided_slice %43 {offsets = [32, 0], sizes = [8, 128], strides = [1, 1]} : vector<48x128xf32> to vector<8x128xf32>
    %181 = tpu.concatenate %180, %32 in 0 : vector<8x128xf32>, vector<8x128xf32> -> vector<16x128xf32>
    %182 = arith.addf %179, %181 : vector<16x128xf32>
    %183 = arith.mulf %182, %20 : vector<16x128xf32>
    %184 = math.tanh %183 : vector<16x128xf32>
    %185 = arith.mulf %20, %184 : vector<16x128xf32>
    %186 = arith.addf %185, %22 : vector<16x128xf32>
    %187 = vector.extract_strided_slice %186 {offsets = [0, 0], sizes = [8, 128], strides = [1, 1]} : vector<16x128xf32> to vector<8x128xf32>
    %188 = vector.extract_strided_slice %187 {offsets = [0, 0], sizes = [8, 32], strides = [1, 1]} : vector<8x128xf32> to vector<8x32xf32>
    %189 = vector.extract_strided_slice %187 {offsets = [0, 32], sizes = [8, 32], strides = [1, 1]} : vector<8x128xf32> to vector<8x32xf32>
    %190 = vector.extract_strided_slice %187 {offsets = [0, 64], sizes = [8, 32], strides = [1, 1]} : vector<8x128xf32> to vector<8x32xf32>
    %191 = vector.extract_strided_slice %187 {offsets = [0, 96], sizes = [8, 32], strides = [1, 1]} : vector<8x128xf32> to vector<8x32xf32>
    %192 = arith.mulf %189, %157 : vector<8x32xf32>
    %193 = arith.mulf %188, %190 : vector<8x32xf32>
    %194 = arith.addf %192, %193 : vector<8x32xf32>
    %195 = vector.extract_strided_slice %186 {offsets = [8, 0], sizes = [8, 128], strides = [1, 1]} : vector<16x128xf32> to vector<8x128xf32>
    %196 = vector.extract_strided_slice %195 {offsets = [0, 0], sizes = [8, 32], strides = [1, 1]} : vector<8x128xf32> to vector<8x32xf32>
    %197 = vector.extract_strided_slice %195 {offsets = [0, 32], sizes = [8, 32], strides = [1, 1]} : vector<8x128xf32> to vector<8x32xf32>
    %198 = vector.extract_strided_slice %195 {offsets = [0, 64], sizes = [8, 32], strides = [1, 1]} : vector<8x128xf32> to vector<8x32xf32>
    %199 = vector.extract_strided_slice %195 {offsets = [0, 96], sizes = [8, 32], strides = [1, 1]} : vector<8x128xf32> to vector<8x32xf32>
    %200 = arith.mulf %197, %165 : vector<8x32xf32>
    %201 = arith.mulf %196, %198 : vector<8x32xf32>
    %202 = arith.addf %200, %201 : vector<8x32xf32>
    %203 = tpu.concatenate %194, %202 in 0 : vector<8x32xf32>, vector<8x32xf32> -> vector<16x32xf32>
    %204 = math.tanh %203 : vector<16x32xf32>
    %205 = vector.extract_strided_slice %204 {offsets = [0, 0], sizes = [8, 32], strides = [1, 1]} : vector<16x32xf32> to vector<8x32xf32>
    %206 = arith.mulf %191, %205 : vector<8x32xf32>
    %207 = vector.extract_strided_slice %204 {offsets = [8, 0], sizes = [8, 32], strides = [1, 1]} : vector<16x32xf32> to vector<8x32xf32>
    %208 = arith.mulf %199, %207 : vector<8x32xf32>
    %c24 = arith.constant 24 : index
    %c0_37 = arith.constant 0 : index
    %209 = vector.load %arg16[%c24, %c0_37] : memref<48x32xf32, #tpu.memory_space<vmem>>, vector<8x32xf32>
    tpu.vector_store %arg16[%c24, %c0_37], %208 {strides = array<i32>} : memref<48x32xf32, #tpu.memory_space<vmem>>, vector<8x32xf32>,
    %210 = tpu.concatenate %25, %206 in 1 : vector<8x32xf32>, vector<8x32xf32> -> vector<8x64xf32>
    %211 = tpu.concatenate %210, %62 in 1 : vector<8x64xf32>, vector<8x64xf32> -> vector<8x128xf32>
    %212 = tpu.concatenate %206, %208 in 1 : vector<8x32xf32>, vector<8x32xf32> -> vector<8x64xf32>
    %213 = tpu.concatenate %62, %212 in 1 : vector<8x64xf32>, vector<8x64xf32> -> vector<8x128xf32>
    %214 = tpu.concatenate %211, %213 in 0 : vector<8x128xf32>, vector<8x128xf32> -> vector<16x128xf32>
    %215 = arith.truncf %214 : vector<16x128xf32> to vector<16x128xbf16>
    %cst_38 = arith.constant dense<0.000000e+00> : vector<16x128xf32>
    %216 = tpu.matmul %215, %34, %cst_38 {dimension_numbers = #tpu.dot_dimension_numbers<[1], [0], [0], [1], [0, 0, 1, 1], [], []>} : vector<16x128xbf16>, vector<128x128xbf16>, vector<16x128xf32> -> vector<16x128xf32>
    %217 = vector.extract_strided_slice %43 {offsets = [40, 0], sizes = [8, 128], strides = [1, 1]} : vector<48x128xf32> to vector<8x128xf32>
    %218 = tpu.concatenate %217, %32 in 0 : vector<8x128xf32>, vector<8x128xf32> -> vector<16x128xf32>
    %219 = arith.addf %216, %218 : vector<16x128xf32>
    %220 = arith.mulf %219, %20 : vector<16x128xf32>
    %221 = math.tanh %220 : vector<16x128xf32>
    %222 = arith.mulf %20, %221 : vector<16x128xf32>
    %223 = arith.addf %222, %22 : vector<16x128xf32>
    %224 = vector.extract_strided_slice %223 {offsets = [0, 0], sizes = [8, 128], strides = [1, 1]} : vector<16x128xf32> to vector<8x128xf32>
    %225 = vector.extract_strided_slice %224 {offsets = [0, 0], sizes = [8, 32], strides = [1, 1]} : vector<8x128xf32> to vector<8x32xf32>
    %226 = vector.extract_strided_slice %224 {offsets = [0, 32], sizes = [8, 32], strides = [1, 1]} : vector<8x128xf32> to vector<8x32xf32>
    %227 = vector.extract_strided_slice %224 {offsets = [0, 64], sizes = [8, 32], strides = [1, 1]} : vector<8x128xf32> to vector<8x32xf32>
    %228 = vector.extract_strided_slice %224 {offsets = [0, 96], sizes = [8, 32], strides = [1, 1]} : vector<8x128xf32> to vector<8x32xf32>
    %229 = arith.mulf %226, %194 : vector<8x32xf32>
    %230 = arith.mulf %225, %227 : vector<8x32xf32>
    %231 = arith.addf %229, %230 : vector<8x32xf32>
    %232 = vector.extract_strided_slice %223 {offsets = [8, 0], sizes = [8, 128], strides = [1, 1]} : vector<16x128xf32> to vector<8x128xf32>
    %233 = vector.extract_strided_slice %232 {offsets = [0, 0], sizes = [8, 32], strides = [1, 1]} : vector<8x128xf32> to vector<8x32xf32>
    %234 = vector.extract_strided_slice %232 {offsets = [0, 32], sizes = [8, 32], strides = [1, 1]} : vector<8x128xf32> to vector<8x32xf32>
    %235 = vector.extract_strided_slice %232 {offsets = [0, 64], sizes = [8, 32], strides = [1, 1]} : vector<8x128xf32> to vector<8x32xf32>
    %236 = vector.extract_strided_slice %232 {offsets = [0, 96], sizes = [8, 32], strides = [1, 1]} : vector<8x128xf32> to vector<8x32xf32>
    %237 = arith.mulf %234, %202 : vector<8x32xf32>
    %238 = arith.mulf %233, %235 : vector<8x32xf32>
    %239 = arith.addf %237, %238 : vector<8x32xf32>
    %240 = tpu.concatenate %231, %239 in 0 : vector<8x32xf32>, vector<8x32xf32> -> vector<16x32xf32>
    %241 = math.tanh %240 : vector<16x32xf32>
    %242 = vector.extract_strided_slice %241 {offsets = [0, 0], sizes = [8, 32], strides = [1, 1]} : vector<16x32xf32> to vector<8x32xf32>
    %243 = arith.mulf %228, %242 : vector<8x32xf32>
    %244 = vector.extract_strided_slice %241 {offsets = [8, 0], sizes = [8, 32], strides = [1, 1]} : vector<16x32xf32> to vector<8x32xf32>
    %245 = arith.mulf %236, %244 : vector<8x32xf32>
    %c32 = arith.constant 32 : index
    %c0_39 = arith.constant 0 : index
    %246 = vector.load %arg16[%c32, %c0_39] : memref<48x32xf32, #tpu.memory_space<vmem>>, vector<8x32xf32>
    tpu.vector_store %arg16[%c32, %c0_39], %245 {strides = array<i32>} : memref<48x32xf32, #tpu.memory_space<vmem>>, vector<8x32xf32>,
    %247 = tpu.concatenate %243, %245 in 1 : vector<8x32xf32>, vector<8x32xf32> -> vector<8x64xf32>
    %248 = vector.extract_strided_slice %34 {offsets = [64, 0], sizes = [64, 128], strides = [1, 1]} : vector<128x128xbf16> to vector<64x128xbf16>
    %249 = arith.truncf %247 : vector<8x64xf32> to vector<8x64xbf16>
    %cst_40 = arith.constant dense<0.000000e+00> : vector<8x128xf32>
    %250 = tpu.matmul %249, %248, %cst_40 {dimension_numbers = #tpu.dot_dimension_numbers<[1], [0], [0], [1], [0, 0, 1, 1], [], []>} : vector<8x64xbf16>, vector<64x128xbf16>, vector<8x128xf32> -> vector<8x128xf32>
    %251 = arith.addf %250, %32 : vector<8x128xf32>
    %252 = arith.mulf %251, %23 : vector<8x128xf32>
    %253 = math.tanh %252 : vector<8x128xf32>
    %254 = arith.mulf %23, %253 : vector<8x128xf32>
    %255 = arith.addf %254, %24 : vector<8x128xf32>
    %256 = vector.extract_strided_slice %255 {offsets = [0, 0], sizes = [8, 32], strides = [1, 1]} : vector<8x128xf32> to vector<8x32xf32>
    %257 = vector.extract_strided_slice %255 {offsets = [0, 32], sizes = [8, 32], strides = [1, 1]} : vector<8x128xf32> to vector<8x32xf32>
    %258 = vector.extract_strided_slice %255 {offsets = [0, 64], sizes = [8, 32], strides = [1, 1]} : vector<8x128xf32> to vector<8x32xf32>
    %259 = vector.extract_strided_slice %255 {offsets = [0, 96], sizes = [8, 32], strides = [1, 1]} : vector<8x128xf32> to vector<8x32xf32>
    %260 = arith.mulf %257, %239 : vector<8x32xf32>
    %261 = arith.mulf %256, %258 : vector<8x32xf32>
    %262 = arith.addf %260, %261 : vector<8x32xf32>
    %263 = math.tanh %262 : vector<8x32xf32>
    %264 = arith.mulf %259, %263 : vector<8x32xf32>
    %c40 = arith.constant 40 : index
    %c0_41 = arith.constant 0 : index
    %265 = vector.load %arg16[%c40, %c0_41] : memref<48x32xf32, #tpu.memory_space<vmem>>, vector<8x32xf32>
    tpu.vector_store %arg16[%c40, %c0_41], %264 {strides = array<i32>} : memref<48x32xf32, #tpu.memory_space<vmem>>, vector<8x32xf32>,
    %c0_42 = arith.constant 0 : index
    %c0_43 = arith.constant 0 : index
    %266 = vector.load %arg16[%c0_42, %c0_43] : memref<48x32xf32, #tpu.memory_space<vmem>>, vector<48x32xf32>
    %267 = vector.shape_cast %266 : vector<48x32xf32> to vector<6x8x32xf32>
    %c0_44 = arith.constant 0 : index
    %c0_45 = arith.constant 0 : index
    %268 = vector.load %arg7[%c0_44, %c0_45] : memref<1x32xf32, #tpu.memory_space<vmem>>, vector<1x32xf32>
    %269 = vector.shape_cast %268 : vector<1x32xf32> to vector<1x1x32xf32>
    %c0_46 = arith.constant 0 : index
    %c0_47 = arith.constant 0 : index
    %270 = vector.load %arg8[%c0_46, %c0_47] : memref<6x1xf32, #tpu.memory_space<vmem>>, vector<6x1xf32>
    %271 = vector.shape_cast %270 : vector<6x1xf32> to vector<6x1x1xf32>
    %272 = vector.broadcast %269 : vector<1x1x32xf32> to vector<6x8x32xf32>
    %273 = arith.mulf %267, %272 : vector<6x8x32xf32>
    %cst_48 = arith.constant dense<0.000000e+00> : vector<6x8xf32>
    %274 = vector.multi_reduction <add>, %273, %cst_48 [2] : vector<6x8x32xf32> to vector<6x8xf32>
    %275 = vector.shape_cast %274 : vector<6x8xf32> to vector<6x8x1xf32>
    %276 = vector.broadcast %271 : vector<6x1x1xf32> to vector<6x8x1xf32>
    %277 = arith.addf %275, %276 : vector<6x8x1xf32>
    %278 = math.tanh %277 : vector<6x8x1xf32>
    %279 = math.exp %278 : vector<6x8x1xf32>
    %cst_49 = arith.constant dense<0.000000e+00> : vector<8x1xf32>
    %280 = vector.multi_reduction <add>, %279, %cst_49 [0] : vector<6x8x1xf32> to vector<8x1xf32>
    %281 = vector.shape_cast %280 : vector<8x1xf32> to vector<1x8x1xf32>
    %cst_50 = arith.constant 1.000000e-10 : f32
    %282 = vector.broadcast %cst_50 : f32 to vector<1x8x1xf32>
    %283 = arith.addf %281, %282 : vector<1x8x1xf32>
    %284 = tpu.reciprocal %283 {approx = true} : vector<1x8x1xf32> -> vector<1x8x1xf32>
    %285 = vector.broadcast %284 : vector<1x8x1xf32> to vector<6x8x1xf32>
    %286 = arith.mulf %279, %285 : vector<6x8x1xf32>
    %287 = vector.broadcast %286 : vector<6x8x1xf32> to vector<6x8x32xf32>
    %288 = arith.mulf %267, %287 : vector<6x8x32xf32>
    %cst_51 = arith.constant dense<0.000000e+00> : vector<8x32xf32>
    %289 = vector.multi_reduction <add>, %288, %cst_51 [0] : vector<6x8x32xf32> to vector<8x32xf32>
    %c0_52 = arith.constant 0 : index
    %c0_53 = arith.constant 0 : index
    %290 = vector.load %arg9[%c0_52, %c0_53] : memref<32x32xf32, #tpu.memory_space<vmem>>, vector<32x32xf32>
    %c0_54 = arith.constant 0 : index
    %c0_55 = arith.constant 0 : index
    %291 = vector.load %arg10[%c0_54, %c0_55] : memref<1x32xf32, #tpu.memory_space<vmem>>, vector<1x32xf32>
    %292 = arith.truncf %289 : vector<8x32xf32> to vector<8x32xbf16>
    %293 = arith.truncf %290 : vector<32x32xf32> to vector<32x32xbf16>
    %cst_56 = arith.constant dense<0.000000e+00> : vector<8x32xf32>
    %294 = tpu.matmul %292, %293, %cst_56 {dimension_numbers = #tpu.dot_dimension_numbers<[1], [0], [0], [1], [0, 0, 1, 1], [], []>} : vector<8x32xbf16>, vector<32x32xbf16>, vector<8x32xf32> -> vector<8x32xf32>
    %295 = vector.broadcast %291 : vector<1x32xf32> to vector<8x32xf32>
    %296 = arith.addf %294, %295 : vector<8x32xf32>
    %cst_57 = arith.constant 0.000000e+00 : f32
    %297 = vector.broadcast %cst_57 : f32 to vector<8x32xf32>
    %298 = arith.maximumf %296, %297 : vector<8x32xf32>
    %c0_58 = arith.constant 0 : index
    %c0_59 = arith.constant 0 : index
    %299 = vector.load %arg11[%c0_58, %c0_59] : memref<32x32xf32, #tpu.memory_space<vmem>>, vector<32x32xf32>
    %c0_60 = arith.constant 0 : index
    %c0_61 = arith.constant 0 : index
    %300 = vector.load %arg12[%c0_60, %c0_61] : memref<1x32xf32, #tpu.memory_space<vmem>>, vector<1x32xf32>
    %301 = arith.truncf %298 : vector<8x32xf32> to vector<8x32xbf16>
    %302 = arith.truncf %299 : vector<32x32xf32> to vector<32x32xbf16>
    %cst_62 = arith.constant dense<0.000000e+00> : vector<8x32xf32>
    %303 = tpu.matmul %301, %302, %cst_62 {dimension_numbers = #tpu.dot_dimension_numbers<[1], [0], [0], [1], [0, 0, 1, 1], [], []>} : vector<8x32xbf16>, vector<32x32xbf16>, vector<8x32xf32> -> vector<8x32xf32>
    %304 = vector.broadcast %300 : vector<1x32xf32> to vector<8x32xf32>
    %305 = arith.addf %303, %304 : vector<8x32xf32>
    %cst_63 = arith.constant 0.000000e+00 : f32
    %306 = vector.broadcast %cst_63 : f32 to vector<8x32xf32>
    %307 = arith.maximumf %305, %306 : vector<8x32xf32>
    %c0_64 = arith.constant 0 : index
    %c0_65 = arith.constant 0 : index
    %308 = vector.load %arg13[%c0_64, %c0_65] : memref<32x128xf32, #tpu.memory_space<vmem>>, vector<32x128xf32>
    %c0_66 = arith.constant 0 : index
    %c0_67 = arith.constant 0 : index
    %309 = vector.load %arg14[%c0_66, %c0_67] : memref<1x128xf32, #tpu.memory_space<vmem>>, vector<1x128xf32>
    %310 = arith.truncf %307 : vector<8x32xf32> to vector<8x32xbf16>
    %311 = arith.truncf %308 : vector<32x128xf32> to vector<32x128xbf16>
    %cst_68 = arith.constant dense<0.000000e+00> : vector<8x128xf32>
    %312 = tpu.matmul %310, %311, %cst_68 {dimension_numbers = #tpu.dot_dimension_numbers<[1], [0], [0], [1], [0, 0, 1, 1], [], []>} : vector<8x32xbf16>, vector<32x128xbf16>, vector<8x128xf32> -> vector<8x128xf32>
    %313 = vector.broadcast %309 : vector<1x128xf32> to vector<8x128xf32>
    %314 = arith.addf %312, %313 : vector<8x128xf32>
    %c0_69 = arith.constant 0 : index
    %c0_70 = arith.constant 0 : index
    %315 = vector.load %arg15[%c0_69, %c0_70] : memref<8x128xf32, #tpu.memory_space<vmem>>, vector<8x128xf32>
    tpu.vector_store %arg15[%c0_69, %c0_70], %314 {strides = array<i32>} : memref<8x128xf32, #tpu.memory_space<vmem>>, vector<8x128xf32>,
    return
  }
}

</mosaic_0001>

<bundles_post_ra>
// kernel: lstm_mlp_att_forward.1
= control target key start
LH: loop header
LB: loop body
LE: loop exit
PB: predicated region body
PF: predicated region fallthrough
CT: control target
= control target key end

     0   :  { %v1554_v0 = vmov 0.0   ;;  %vm1555_vm0 = vmmov 0   ;;  %vm113_vm1 = vcmask 261120   ;;  %v57_v10 = vlaneseq  ;;  %s1558_s16 = smov 32   ;;  %s2161_s1 = inlined_call_operand.vmem [shape: f32[32,128], index: 1, kind: input, shape index: {}]   ;;  %s2162_s0 = inlined_call_operand.vmem [shape: f32[6,8,32], index: 0, kind: input, shape index: {}]   ;;  %s2163_s3 = inlined_call_operand.vmem [shape: f32[1,128], index: 3, kind: input, shape index: {}]   ;;  %s2164_s2 = inlined_call_operand.vmem [shape: f32[32,128], index: 2, kind: input, shape index: {}]   ;;  %s2165_s4 = inlined_call_operand.vmem [shape: f32[32,128], index: 4, kind: input, shape index: {}]   ;;  %s2166_s5 = inlined_call_operand.vmem [shape: f32[32,128], index: 5, kind: input, shape index: {}]   ;;  %s2167_s6 = inlined_call_operand.vmem [shape: f32[1,128], index: 6, kind: input, shape index: {}]   ;;  %s2168_s7 = inlined_call_operand.vmem [shape: f32[1,32], index: 7, kind: input, shape index: {}]   ;;  %s2169_s8 = inlined_call_operand.vmem [shape: f32[6,1], index: 8, kind: input, shape index: {}]   ;;  %s2170_s9 = inlined_call_operand.vmem [shape: f32[32,32], index: 9, kind: input, shape index: {}]   ;;  %s2171_s11 = inlined_call_operand.vmem [shape: f32[32,32], index: 11, kind: input, shape index: {}]   ;;  %s2172_s13 = inlined_call_operand.vmem [shape: f32[32,128], index: 13, kind: input, shape index: {}]   ;;  %s2173_s10 = inlined_call_operand.vmem [shape: f32[1,32], index: 10, kind: input, shape index: {}]   ;;  %s2174_s12 = inlined_call_operand.vmem [shape: f32[1,32], index: 12, kind: input, shape index: {}]   ;;  %s2175_s14 = inlined_call_operand.vmem [shape: f32[1,128], index: 14, kind: input, shape index: {}]   ;;  %s2176_s15 = inlined_call_operand.vmem [shape: f32[8,128], index: 15, kind: output, shape index: {}]  }
   0x1   :  { %1293 = vmatprep.subr.bf16.mxu0 %v1554_v0  ;;  %v97_v1 = vld [vmem:[%s2161_s1] sm:$0xff]  ;;  %v98_v2 = vld [vmem:[%s2161_s1 + $0x8] sm:$0xff]  ;;  %v99_v3 = vld [vmem:[%s2161_s1 + $0x10] sm:$0xff]  ;;  %1297 = vmatprep.mubr.msk.bf16.mxu0 %vm1555_vm0, %v1554_v0  ;;  %vm51_vm2 = vcmask 523264   ;;  %v1556_v12 = vmov 1.0   ;;  %vm53_vm3 = vcmask 785408  }
   0x2   :  { %v104_v4 = vpack.c.bf16 %v98_v2, %v97_v1  ;;  %v100_v5 = vld [vmem:[%s2161_s1 + $0x18] sm:$0xff]  ;;  %1309 = vmatprep.subr.bf16.mxu1 %v1554_v0  ;;  %1325 = vmatprep.mubr.msk.bf16.mxu1 %vm1555_vm0, %v1554_v0  ;;  %v91_v7 = vld [vmem:[%s2162_s0] sm:$0xff]  ;;  %v92_v8 = vld [vmem:[%s2162_s0 + $0x8] sm:$0xff]  ;;  %v1671_v11 = vshrl.u32 %v57_v10, 7  ;;  %v52_v13 = vsel %vm51_vm2, 0.5, %v1556_v12  ;;  %v55_v24 = vsel %vm51_vm2, 0.5, %v1554_v0 }
   0x3   :  { %v105_v6 = vpack.c.bf16 %v100_v5, %v99_v3  ;;  %v101_v9 = vpack.c.bf16 %v92_v8, %v91_v7  ;;  %v54_v15 = vsel %vm53_vm3, %v52_v13, 0.5  ;;  %v1680_v16 = vld [vmem:[%s2163_s3] ss:$0 sm:$0xff]  ;;  %v56_v25 = vsel %vm53_vm3, %v55_v24, 0.5  ;;  %s1557_s3 = smov 64   ;;  %v66_v38 = vld [vmem:[%s2164_s2 + $0x8] sm:$0xff]  ;;  %vm1201_vm4 = vmneg %vm51_vm2 }
   0x4   :  { %1294 = vmatpush3.bf16.msra.mxu0 %v104_v4  ;;  %v1675_v14 = vsub.s32 0, %v1671_v11  ;;  %v1559_v36 = vmov 0.0|0.0   ;;  %v65_v37 = vld [vmem:[%s2164_s2] sm:$0xff]  ;;  %v67_v40 = vld [vmem:[%s2164_s2 + $0x10] sm:$0xff]  ;;  %v68_v41 = vld [vmem:[%s2164_s2 + $0x18] sm:$0xff]  ;;  %vm951_vm6 = vcmask 7168  }
   0x5   :  { %1295 = vmatprep.subr.bf16.mxu0 %v1554_v0  ;;  %1310 = vmatpush3.bf16.msra.mxu1 %v1559_v36  ;;  %v1713_v39 = vpack.c.bf16 %v66_v38, %v65_v37  ;;  %v1725_v44 = vpack.c.bf16 %v68_v41, %v67_v40  ;;  %v69_v45 = vld [vmem:[%s2165_s4] sm:$0xff]  ;;  %v70_v46 = vld [vmem:[%s2165_s4 + $0x8] sm:$0xff]  ;;  %v71_v48 = vld [vmem:[%s2165_s4 + $0x10] sm:$0xff] }
   0x6   :  { %v1683_v17 = vrot.slane %v54_v15, %v1675_v14  ;;  %v1692_v26 = vrot.slane %v56_v25, %v1675_v14  ;;  %1311 = vmatprep.subr.bf16.mxu1 %v1554_v0  ;;  %v1738_v47 = vpack.c.bf16 %v70_v46, %v69_v45  ;;  %v72_v49 = vld [vmem:[%s2165_s4 + $0x18] sm:$0xff]  ;;  %v73_v51 = vld [vmem:[%s2166_s5] sm:$0xff]  ;;  %v74_v52 = vld [vmem:[%s2166_s5 + $0x8] sm:$0xff] }
   0x7   :  { %v1750_v50 = vpack.c.bf16 %v72_v49, %v71_v48  ;;  %v1762_v53 = vpack.c.bf16 %v74_v52, %v73_v51  ;;  %v75_v54 = vld [vmem:[%s2166_s5 + $0x10] sm:$0xff]  ;;  %v76_v55 = vld [vmem:[%s2166_s5 + $0x18] sm:$0xff]  ;;  %vm1788_vm5 = vmpackc.low %vm1201_vm4, %vm51_vm2 }
   0x8   :  { %1296 = vmatpush3.bf16.msra.mxu0 %v105_v6  ;;  %v1777_v56 = vpack.c.bf16 %v76_v55, %v75_v54  ;;  %v1817_v5 = vld [vmem:[%s2167_s6] ss:$0 sm:$0xff]  ;;  %v94_v38 = vld [vmem:[%s2162_s0 + $0x18] sm:$0xff] }
   0x9   :  { %1329 = vmatprep.subr.bf16.mxu0 %v1554_v0  ;;  %1312 = vmatpush3.bf16.msra.mxu1 %v1559_v36  ;;  %v95_v41 = vld [vmem:[%s2162_s0 + $0x20] sm:$0xff] }
   0xa   :  { %1313 = vmatprep.subr.bf16.mxu1 %v1554_v0 }
   0xb   :  { %1298 = vmatmul.mubr.msk.bf16.vlgmr.msra.gmra.mrb[0].mxu0 %vm113_vm1, %v101_v9 }
   0xc   :  { %1301 = vmatprep.mubr.msk.bf16.mxu0 %vm1555_vm0, %v1554_v0  ;;  %1330 = vmatpush3.bf16.msra.mxu0 %v1559_v36 }
   0xd   :  { %1331 = vmatprep.subr.bf16.mxu0 %v1554_v0  ;;  %1314 = vmatpush3.bf16.msra.mxu1 %v1713_v39 }
   0xe   :  { %1315 = vmatprep.subr.bf16.mxu1 %v1554_v0 }
  0x10   :  { %1332 = vmatpush3.bf16.msra.mxu0 %v1559_v36 }
  0x11   :  { %1333 = vmatprep.subr.bf16.mxu0 %v1554_v0  ;;  %1316 = vmatpush3.bf16.msra.mxu1 %v1725_v44 }
  0x12   :  { %1317 = vmatprep.subr.bf16.mxu1 %v1554_v0 }
  0x14   :  { %1334 = vmatpush3.bf16.msra.mxu0 %v1713_v39 }
  0x15   :  { %1335 = vmatprep.subr.bf16.mxu0 %v1554_v0  ;;  %1318 = vmatpush3.bf16.msra.mxu1 %v1738_v47 }
  0x16   :  { %1319 = vmatprep.subr.bf16.mxu1 %v1554_v0 }
  0x18   :  { %1336 = vmatpush3.bf16.msra.mxu0 %v1725_v44 }
  0x19   :  { %1337 = vmatprep.subr.bf16.mxu0 %v1554_v0  ;;  %1320 = vmatpush3.bf16.msra.mxu1 %v1750_v50 }
  0x1a   :  { %1321 = vmatprep.subr.bf16.mxu1 %v1554_v0 }
  0x1c   :  { %1338 = vmatpush3.bf16.msra.mxu0 %v1738_v47 }
  0x1d   :  { %1339 = vmatprep.subr.bf16.mxu0 %v1554_v0  ;;  %1322 = vmatpush3.bf16.msra.mxu1 %v1762_v53 }
  0x1e   :  { %1323 = vmatprep.subr.bf16.mxu1 %v1554_v0 }
  0x20   :  { %1340 = vmatpush3.bf16.msra.mxu0 %v1750_v50 }
  0x21   :  { %1341 = vmatprep.subr.bf16.mxu0 %v1554_v0  ;;  %1324 = vmatpush3.bf16.msra.mxu1 %v1777_v56 }
  0x22   :  { %1349 = vmatprep.subr.bf16.mxu1 %v1554_v0 }
  0x24   :  { %1342 = vmatpush3.bf16.msra.mxu0 %v1762_v53 }
  0x25   :  { %1343 = vmatprep.subr.bf16.mxu0 %v1554_v0 }
  0x28   :  { %1344 = vmatpush3.bf16.msra.mxu0 %v1777_v56 }
  0x29   :  { %1369 = vmatprep.subr.bf16.mxu0 %v1554_v0 }
  0xde   :  { %v157_v18 = vpop.f32.mrb[0].mxu0 }
  0xdf   :  { %v158_v19 = vadd.f32 %v1680_v16, %v157_v18  ;;  %v1299_v20 = vpop.f32.mrb[1].mxu0 }
  0xe0   :  { %v1686_v21 = vpop.f32.mrb[2].mxu0 }
  0xe1   :  { %v180_v22 = vmul.f32 %v158_v19, %v1683_v17  ;;  %v1300_v23 = vpop.f32.mrb[3].mxu0  ;;  %v161_v3 = vadd.f32 %v1680_v16, %v1686_v21 }
  0xe3   :  { %1480 = vtanh.f32 %v180_v22 }
  0xed   :  { %v1481_v27 = vpop.eup %1480 }
  0xee   :  { %v182_v28 = vmul.f32 %v1481_v27, %v1683_v17 }
  0xf0   :  { %v183_v29 = vadd.f32 %v182_v28, %v1692_v26 }
  0xf2   :  { %186 = vrot.lane.b32.xlu0 %v183_v29, %s1557_s3  ;;  %v184_v32 = vmul.f32 0.0, %v183_v29 }
 0x164   :  { %v187_v30 = vpop.permute.xlu0 %186 }
 0x165   :  { %v189_v31 = vmul.f32 %v187_v30, %v183_v29 }
 0x167   :  { %191 = vrot.lane.b32.xlu0 %v189_v31, %s1558_s16 }
 0x1d9   :  { %v192_v33 = vpop.permute.xlu0 %191 }
 0x1da   :  { %v1698_v34 = vadd.f32 %v192_v33, %v184_v32 }
 0x1dc   :  { %1482 = vtanh.f32 %v1698_v34 }
 0x1e6   :  { %v1483_v35 = vpop.eup %1482 }
 0x1e7   :  { %197 = vrot.lane.b32.xlu1 %v1483_v35, %s1557_s3 }
 0x259   :  { %v198_v42 = vpop.permute.xlu1 %197 }
 0x25a   :  { %v200_v43 = vmul.f32 %v198_v42, %v183_v29  ;;  %v96_v42 = vld [vmem:[%s2162_s0 + $0x28] sm:$0xff] }
 0x25b   :  { %v103_v48 = vpack.c.bf16 %v96_v42, %v95_v41 }
 0x25c   :  { %207 = vrot.lane.b32.xlu1 %v200_v43, %s1558_s16 }
 0x2ce   :  { %v208_v57 = vpop.permute.xlu1 %207 }
 0x2cf   :  { %v210_v58 = vsel %vm113_vm1, %v208_v57, 0.0 }
 0x2d0   :  { %v1453_v59 = vpack.i.bf16 %v210_v58, %v200_v43 }
 0x2d2   :  { %1454 = vrot.lane.b32.xlu0 %v1453_v59, %s1557_s3 }
 0x344   :  { %v1455_v60 = vpop.permute.xlu0 %1454 }
 0x345   :  { %v1457_v61 = vunpack.i.h.bf16 %v1455_v60  ;;  %v1456_v62 = vunpack.i.l.bf16 %v1455_v60 }
 0x347   :  { %v205_v63 = vsel %vm113_vm1, 0.0, %v1456_v62 }
 0x348   :  { %v1203_v2 = vpack.c.bf16 %v1457_v61, %v205_v63 }
 0x34a   :  { %1326 = vmatmul.mubr.msk.bf16.vlgmr.msra.gmra.mrb[0].mxu1 %vm1788_vm5, %v1203_v2 }
 0x34b   :  { %1350 = vmatpush3.bf16.msra.mxu1 %v1559_v36  ;;  %1365 = vmatprep.mubr.msk.bf16.mxu1 %vm1555_vm0, %v1554_v0 }
 0x34c   :  { %1351 = vmatprep.subr.bf16.mxu1 %v1554_v0 }
 0x34f   :  { %1352 = vmatpush3.bf16.msra.mxu1 %v1559_v36 }
 0x350   :  { %1353 = vmatprep.subr.bf16.mxu1 %v1554_v0 }
 0x353   :  { %1354 = vmatpush3.bf16.msra.mxu1 %v1713_v39 }
 0x354   :  { %1355 = vmatprep.subr.bf16.mxu1 %v1554_v0 }
 0x357   :  { %1356 = vmatpush3.bf16.msra.mxu1 %v1725_v44 }
 0x358   :  { %1357 = vmatprep.subr.bf16.mxu1 %v1554_v0 }
 0x35b   :  { %1358 = vmatpush3.bf16.msra.mxu1 %v1738_v47 }
 0x35c   :  { %1359 = vmatprep.subr.bf16.mxu1 %v1554_v0 }
 0x35f   :  { %1360 = vmatpush3.bf16.msra.mxu1 %v1750_v50 }
 0x360   :  { %1361 = vmatprep.subr.bf16.mxu1 %v1554_v0 }
 0x363   :  { %1362 = vmatpush3.bf16.msra.mxu1 %v1762_v53 }
 0x364   :  { %1363 = vmatprep.subr.bf16.mxu1 %v1554_v0 }
 0x367   :  { %1364 = vmatpush3.bf16.msra.mxu1 %v1777_v56 }
 0x368   :  { %1389 = vmatprep.subr.bf16.mxu1 %v1554_v0 }
 0x41d   :  { %v251_v4 = vpop.f32.mrb[0].mxu1 }
 0x41e   :  { %v252_v6 = vadd.f32 %v251_v4, %v161_v3  ;;  %v1327_v7 = vpop.f32.mrb[1].mxu1 }
 0x41f   :  { %v254_v8 = vpop.f32.mrb[2].mxu1 }
 0x420   :  { %v258_v9 = vmul.f32 %v252_v6, %v1683_v17  ;;  %v255_v10 = vadd.f32 %v1817_v5, %v254_v8  ;;  %v1328_v12 = vpop.f32.mrb[3].mxu1 }
 0x422   :  { %1484 = vtanh.f32 %v258_v9  ;;  %v259_v13 = vmul.f32 %v255_v10, %v1683_v17 }
 0x424   :  { %1486 = vtanh.f32 %v259_v13 }
 0x42c   :  { %v1485_v15 = vpop.eup %1484 }
 0x42d   :  { %v262_v18 = vmul.f32 %v1485_v15, %v1683_v17 }
 0x42e   :  { %v1487_v19 = vpop.eup %1486 }
 0x42f   :  { %v264_v20 = vadd.f32 %v262_v18, %v1692_v26  ;;  %v263_v21 = vmul.f32 %v1487_v19, %v1683_v17 }
 0x431   :  { %268 = vrot.lane.b32.xlu1 %v264_v20, %s1557_s3  ;;  %v265_v22 = vadd.f32 %v263_v21, %v1692_v26  ;;  %v266_v28 = vmul.f32 %v264_v20, %v1698_v34  ;;  %v93_v34 = vld [vmem:[%s2162_s0 + $0x10] sm:$0xff] }
 0x432   :  { %v102_v40 = vpack.c.bf16 %v94_v38, %v93_v34 }
 0x433   :  { %279 = vrot.lane.b32.xlu0 %v265_v22, %s1557_s3  ;;  %v277_v31 = vmul.f32 0.0, %v265_v22 }
 0x434   :  { %1302 = vmatmul.mubr.msk.bf16.gmra.mrb[4].mxu0 %vm113_vm1, %v102_v40 }
 0x435   :  { %1305 = vmatprep.mubr.msk.bf16.mxu0 %vm1555_vm0, %v1554_v0 }
 0x43c   :  { %1306 = vmatmul.mubr.msk.bf16.gmra.mrb[8].mxu0 %vm113_vm1, %v103_v48 }
 0x43d   :  { %1345 = vmatprep.mubr.msk.bf16.mxu0 %vm1555_vm0, %v1554_v0 }
 0x4a3   :  { %v269_v23 = vpop.permute.xlu1 %268 }
 0x4a4   :  { %v271_v24 = vmul.f32 %v269_v23, %v264_v20 }
 0x4a5   :  { %v280_v25 = vpop.permute.xlu0 %279 }
 0x4a6   :  { %v282_v27 = vmul.f32 %v280_v25, %v265_v22  ;;  %273 = vrot.lane.b32.xlu1 %v271_v24, %s1558_s16 }
 0x4a8   :  { %284 = vrot.lane.b32.xlu0 %v282_v27, %s1558_s16 }
 0x507   :  { %v165_v57 = vpop.f32.mrb[4].mxu0 }
 0x508   :  { %v1303_v58 = vpop.f32.mrb[5].mxu0  ;;  %v166_v9 = vadd.f32 %v1680_v16, %v165_v57 }
 0x509   :  { %v1864_v59 = vpop.f32.mrb[6].mxu0 }
 0x50a   :  { %v1304_v60 = vpop.f32.mrb[7].mxu0 }
 0x50f   :  { %v1866_v61 = vpop.f32.mrb[8].mxu0 }
 0x510   :  { %v1307_v62 = vpop.f32.mrb[9].mxu0 }
 0x511   :  { %v1868_v63 = vpop.f32.mrb[10].mxu0 }
 0x512   :  { %v1308_v2 = vpop.f32.mrb[11].mxu0 }
 0x518   :  { %v274_v29 = vpop.permute.xlu1 %273 }
 0x519   :  { %v1831_v30 = vadd.f32 %v274_v29, %v266_v28 }
 0x51a   :  { %v285_v32 = vpop.permute.xlu0 %284 }
 0x51b   :  { %1488 = vtanh.f32 %v1831_v30  ;;  %v1834_v33 = vadd.f32 %v285_v32, %v277_v31 }
 0x51d   :  { %1490 = vtanh.f32 %v1834_v33 }
 0x525   :  { %v1489_v35 = vpop.eup %1488 }
 0x526   :  { %291 = vrot.lane.b32.xlu1 %v1489_v35, %s1557_s3 }
 0x527   :  { %v1491_v37 = vpop.eup %1490 }
 0x528   :  { %296 = vrot.lane.b32.xlu0 %v1491_v37, %s1557_s3 }
 0x598   :  { %v292_v43 = vpop.permute.xlu1 %291 }
 0x599   :  { %v294_v45 = vmul.f32 %v292_v43, %v264_v20 }
 0x59a   :  { %v297_v46 = vpop.permute.xlu0 %296 }
 0x59b   :  { %v1854_v49 = vmul.f32 %v297_v46, %v265_v22  ;;  %311 = vrot.lane.b32.xlu1 %v294_v45, %s1558_s16 }
 0x59d   :  { %314 = vrot.lane.b32.xlu0 %v1854_v49, %s1557_s3 }
 0x60d   :  { %v312_v51 = vpop.permute.xlu1 %311 }
 0x60f   :  { %v315_v52 = vpop.permute.xlu0 %314 }
 0x610   :  { %v317_v54 = vsel %vm113_vm1, %v312_v51, %v315_v52 }
 0x611   :  { %v1458_v55 = vpack.i.bf16 %v317_v54, %v294_v45 }
 0x613   :  { %1459 = vrot.lane.b32.xlu1 %v1458_v55, %s1557_s3 }
 0x685   :  { %v1460_v3 = vpop.permute.xlu1 %1459 }
 0x686   :  { %v1462_v4 = vunpack.i.h.bf16 %v1460_v3  ;;  %v1461_v6 = vunpack.i.l.bf16 %v1460_v3 }
 0x688   :  { %v309_v7 = vsel %vm113_vm1, 0.0, %v1461_v6 }
 0x689   :  { %v1207_v8 = vpack.c.bf16 %v1462_v4, %v309_v7 }
 0x68b   :  { %1346 = vmatmul.mubr.msk.bf16.vlgmr.msra.gmra.mrb[12].mxu0 %vm1788_vm5, %v1207_v8 }
 0x68c   :  { %1370 = vmatpush3.bf16.msra.mxu0 %v1559_v36  ;;  %1385 = vmatprep.mubr.msk.bf16.mxu0 %vm1555_vm0, %v1554_v0 }
 0x68d   :  { %1371 = vmatprep.subr.bf16.mxu0 %v1554_v0 }
 0x690   :  { %1372 = vmatpush3.bf16.msra.mxu0 %v1559_v36 }
 0x691   :  { %1373 = vmatprep.subr.bf16.mxu0 %v1554_v0 }
 0x694   :  { %1374 = vmatpush3.bf16.msra.mxu0 %v1713_v39 }
 0x695   :  { %1375 = vmatprep.subr.bf16.mxu0 %v1554_v0 }
 0x698   :  { %1376 = vmatpush3.bf16.msra.mxu0 %v1725_v44 }
 0x699   :  { %1377 = vmatprep.subr.bf16.mxu0 %v1554_v0 }
 0x69c   :  { %1378 = vmatpush3.bf16.msra.mxu0 %v1738_v47 }
 0x69d   :  { %1379 = vmatprep.subr.bf16.mxu0 %v1554_v0 }
 0x6a0   :  { %1380 = vmatpush3.bf16.msra.mxu0 %v1750_v50 }
 0x6a1   :  { %1381 = vmatprep.subr.bf16.mxu0 %v1554_v0 }
 0x6a4   :  { %1382 = vmatpush3.bf16.msra.mxu0 %v1762_v53 }
 0x6a5   :  { %1383 = vmatprep.subr.bf16.mxu0 %v1554_v0 }
 0x6a8   :  { %1384 = vmatpush3.bf16.msra.mxu0 %v1777_v56 }
 0x6a9   :  { %1409 = vmatprep.subr.bf16.mxu0 %v1554_v0 }
 0x75e   :  { %v358_v10 = vpop.f32.mrb[12].mxu0 }
 0x75f   :  { %v359_v12 = vadd.f32 %v358_v10, %v166_v9  ;;  %v1347_v13 = vpop.f32.mrb[13].mxu0 }
 0x760   :  { %v361_v15 = vpop.f32.mrb[14].mxu0 }
 0x761   :  { %v365_v18 = vmul.f32 %v359_v12, %v1683_v17  ;;  %v362_v19 = vadd.f32 %v1817_v5, %v361_v15  ;;  %v1348_v20 = vpop.f32.mrb[15].mxu0 }
 0x763   :  { %1492 = vtanh.f32 %v365_v18  ;;  %v366_v21 = vmul.f32 %v362_v19, %v1683_v17 }
 0x765   :  { %1494 = vtanh.f32 %v366_v21 }
 0x76d   :  { %v1493_v22 = vpop.eup %1492 }
 0x76e   :  { %v369_v23 = vmul.f32 %v1493_v22, %v1683_v17 }
 0x76f   :  { %v1495_v24 = vpop.eup %1494 }
 0x770   :  { %v371_v25 = vadd.f32 %v369_v23, %v1692_v26  ;;  %v370_v27 = vmul.f32 %v1495_v24, %v1683_v17 }
 0x772   :  { %375 = vrot.lane.b32.xlu0 %v371_v25, %s1557_s3  ;;  %v372_v28 = vadd.f32 %v370_v27, %v1692_v26  ;;  %v373_v37 = vmul.f32 %v371_v25, %v1831_v30 }
 0x774   :  { %386 = vrot.lane.b32.xlu1 %v372_v28, %s1557_s3  ;;  %v384_v40 = vmul.f32 %v372_v28, %v1834_v33 }
 0x7e4   :  { %v376_v29 = vpop.permute.xlu0 %375 }
 0x7e5   :  { %v378_v31 = vmul.f32 %v376_v29, %v371_v25 }
 0x7e6   :  { %v387_v32 = vpop.permute.xlu1 %386 }
 0x7e7   :  { %v389_v35 = vmul.f32 %v387_v32, %v372_v28  ;;  %380 = vrot.lane.b32.xlu0 %v378_v31, %s1558_s16 }
 0x7e9   :  { %391 = vrot.lane.b32.xlu1 %v389_v35, %s1558_s16 }
 0x859   :  { %v381_v34 = vpop.permute.xlu0 %380 }
 0x85a   :  { %v1904_v38 = vadd.f32 %v381_v34, %v373_v37 }
 0x85b   :  { %v392_v41 = vpop.permute.xlu1 %391 }
 0x85c   :  { %1496 = vtanh.f32 %v1904_v38  ;;  %v1908_v42 = vadd.f32 %v392_v41, %v384_v40 }
 0x85e   :  { %1498 = vtanh.f32 %v1908_v42 }
 0x866   :  { %v1497_v43 = vpop.eup %1496 }
 0x867   :  { %398 = vrot.lane.b32.xlu0 %v1497_v43, %s1557_s3 }
 0x868   :  { %v1499_v45 = vpop.eup %1498 }
 0x869   :  { %403 = vrot.lane.b32.xlu1 %v1499_v45, %s1557_s3 }
 0x8d9   :  { %v399_v46 = vpop.permute.xlu0 %398 }
 0x8da   :  { %v401_v30 = vmul.f32 %v399_v46, %v371_v25 }
 0x8db   :  { %v404_v48 = vpop.permute.xlu1 %403 }
 0x8dc   :  { %v1913_v51 = vmul.f32 %v404_v48, %v372_v28  ;;  %418 = vrot.lane.b32.xlu0 %v401_v30, %s1558_s16 }
 0x8de   :  { %421 = vrot.lane.b32.xlu1 %v1913_v51, %s1557_s3 }
 0x94e   :  { %v419_v33 = vpop.permute.xlu0 %418 }
 0x950   :  { %v422_v52 = vpop.permute.xlu1 %421 }
 0x951   :  { %v424_v54 = vsel %vm113_vm1, %v419_v33, %v422_v52 }
 0x952   :  { %v1463_v55 = vpack.i.bf16 %v424_v54, %v401_v30 }
 0x954   :  { %1464 = vrot.lane.b32.xlu0 %v1463_v55, %s1557_s3 }
 0x9c6   :  { %v1465_v57 = vpop.permute.xlu0 %1464 }
 0x9c7   :  { %v1467_v58 = vunpack.i.h.bf16 %v1465_v57  ;;  %v1466_v60 = vunpack.i.l.bf16 %v1465_v57 }
 0x9c9   :  { %v416_v62 = vsel %vm113_vm1, 0.0, %v1466_v60 }
 0x9ca   :  { %v1211_v2 = vpack.c.bf16 %v1467_v58, %v416_v62 }
 0x9cc   :  { %1366 = vmatmul.mubr.msk.bf16.vlgmr.msra.gmra.mrb[4].mxu1 %vm1788_vm5, %v1211_v2 }
 0x9cd   :  { %1390 = vmatpush3.bf16.msra.mxu1 %v1559_v36  ;;  %1405 = vmatprep.mubr.msk.bf16.mxu1 %vm1555_vm0, %v1554_v0 }
 0x9ce   :  { %1391 = vmatprep.subr.bf16.mxu1 %v1554_v0 }
 0x9d1   :  { %1392 = vmatpush3.bf16.msra.mxu1 %v1559_v36  ;;  %v169_v36 = vadd.f32 %v1680_v16, %v1864_v59 }
 0x9d2   :  { %1393 = vmatprep.subr.bf16.mxu1 %v1554_v0 }
 0x9d5   :  { %1394 = vmatpush3.bf16.msra.mxu1 %v1713_v39 }
 0x9d6   :  { %1395 = vmatprep.subr.bf16.mxu1 %v1554_v0 }
 0x9d9   :  { %1396 = vmatpush3.bf16.msra.mxu1 %v1725_v44 }
 0x9da   :  { %1397 = vmatprep.subr.bf16.mxu1 %v1554_v0 }
 0x9dd   :  { %1398 = vmatpush3.bf16.msra.mxu1 %v1738_v47 }
 0x9de   :  { %1399 = vmatprep.subr.bf16.mxu1 %v1554_v0 }
 0x9e1   :  { %1400 = vmatpush3.bf16.msra.mxu1 %v1750_v50 }
 0x9e2   :  { %1401 = vmatprep.subr.bf16.mxu1 %v1554_v0 }
 0x9e5   :  { %1402 = vmatpush3.bf16.msra.mxu1 %v1762_v53 }
 0x9e6   :  { %1403 = vmatprep.subr.bf16.mxu1 %v1554_v0 }
 0x9e9   :  { %1404 = vmatpush3.bf16.msra.mxu1 %v1777_v56 }
 0x9ea   :  { %1437 = vmatprep.subr.bf16.mxu1 %v1554_v0 }
 0xa9f   :  { %v465_v39 = vpop.f32.mrb[4].mxu1 }
 0xaa0   :  { %v466_v44 = vadd.f32 %v465_v39, %v169_v36  ;;  %v1367_v3 = vpop.f32.mrb[5].mxu1 }
 0xaa1   :  { %v468_v4 = vpop.f32.mrb[6].mxu1 }
 0xaa2   :  { %v472_v6 = vmul.f32 %v466_v44, %v1683_v17  ;;  %v469_v7 = vadd.f32 %v1817_v5, %v468_v4  ;;  %v1368_v8 = vpop.f32.mrb[7].mxu1 }
 0xaa4   :  { %1500 = vtanh.f32 %v472_v6  ;;  %v473_v9 = vmul.f32 %v469_v7, %v1683_v17 }
 0xaa6   :  { %1502 = vtanh.f32 %v473_v9 }
 0xaae   :  { %v1501_v10 = vpop.eup %1500 }
 0xaaf   :  { %v476_v12 = vmul.f32 %v1501_v10, %v1683_v17 }
 0xab0   :  { %v1503_v13 = vpop.eup %1502 }
 0xab1   :  { %v478_v15 = vadd.f32 %v476_v12, %v1692_v26  ;;  %v477_v59 = vmul.f32 %v1503_v13, %v1683_v17 }
 0xab3   :  { %482 = vrot.lane.b32.xlu1 %v478_v15, %s1557_s3  ;;  %v479_v18 = vadd.f32 %v477_v59, %v1692_v26  ;;  %v480_v23 = vmul.f32 %v478_v15, %v1904_v38 }
 0xab5   :  { %493 = vrot.lane.b32.xlu0 %v479_v18, %s1557_s3  ;;  %v491_v27 = vmul.f32 %v479_v18, %v1908_v42 }
 0xb25   :  { %v483_v19 = vpop.permute.xlu1 %482 }
 0xb26   :  { %v485_v20 = vmul.f32 %v483_v19, %v478_v15 }
 0xb27   :  { %v494_v21 = vpop.permute.xlu0 %493 }
 0xb28   :  { %v496_v22 = vmul.f32 %v494_v21, %v479_v18  ;;  %487 = vrot.lane.b32.xlu1 %v485_v20, %s1558_s16 }
 0xb2a   :  { %498 = vrot.lane.b32.xlu0 %v496_v22, %s1558_s16 }
 0xb9a   :  { %v488_v24 = vpop.permute.xlu1 %487 }
 0xb9b   :  { %v490_v25 = vadd.f32 %v488_v24, %v480_v23 }
 0xb9c   :  { %v499_v28 = vpop.permute.xlu0 %498 }
 0xb9d   :  { %1504 = vtanh.f32 %v490_v25  ;;  %v501_v29 = vadd.f32 %v499_v28, %v491_v27 }
 0xb9f   :  { %1506 = vtanh.f32 %v501_v29 }
 0xba7   :  { %v1505_v31 = vpop.eup %1504 }
 0xba8   :  { %505 = vrot.lane.b32.xlu1 %v1505_v31, %s1557_s3 }
 0xba9   :  { %v1507_v32 = vpop.eup %1506 }
 0xbaa   :  { %510 = vrot.lane.b32.xlu0 %v1507_v32, %s1557_s3 }
 0xc1a   :  { %v506_v35 = vpop.permute.xlu1 %505 }
 0xc1b   :  { %v508_v37 = vmul.f32 %v506_v35, %v478_v15  ;;  %v177_v35 = vadd.f32 %v1680_v16, %v1868_v63 }
 0xc1c   :  { %v511_v34 = vpop.permute.xlu0 %510 }
 0xc1d   :  { %v1958_v40 = vmul.f32 %v511_v34, %v479_v18  ;;  %525 = vrot.lane.b32.xlu1 %v508_v37, %s1558_s16 }
 0xc1f   :  { %528 = vrot.lane.b32.xlu0 %v1958_v40, %s1557_s3 }
 0xc8f   :  { %v526_v38 = vpop.permute.xlu1 %525 }
 0xc91   :  { %v529_v41 = vpop.permute.xlu0 %528 }
 0xc92   :  { %v531_v42 = vsel %vm113_vm1, %v526_v38, %v529_v41 }
 0xc93   :  { %v1468_v43 = vpack.i.bf16 %v531_v42, %v508_v37 }
 0xc95   :  { %1469 = vrot.lane.b32.xlu1 %v1468_v43, %s1557_s3 }
 0xd07   :  { %v1470_v45 = vpop.permute.xlu1 %1469 }
 0xd08   :  { %v1472_v46 = vunpack.i.h.bf16 %v1470_v45  ;;  %v1471_v30 = vunpack.i.l.bf16 %v1470_v45 }
 0xd0a   :  { %v523_v48 = vsel %vm113_vm1, 0.0, %v1471_v30 }
 0xd0b   :  { %v1215_v33 = vpack.c.bf16 %v1472_v46, %v523_v48 }
 0xd0d   :  { %1386 = vmatmul.mubr.msk.bf16.vlgmr.msra.gmra.mrb[16].mxu0 %vm1788_vm5, %v1215_v33 }
 0xd0e   :  { %1410 = vmatpush3.bf16.msra.mxu0 %v1738_v47  ;;  %1417 = vmatprep.mubr.msk.bf16.mxu0 %vm1555_vm0, %v1554_v0  ;;  %v174_v47 = vadd.f32 %v1680_v16, %v1866_v61 }
 0xd0f   :  { %1411 = vmatprep.subr.bf16.mxu0 %v1554_v0 }
 0xd12   :  { %1412 = vmatpush3.bf16.msra.mxu0 %v1750_v50 }
 0xd13   :  { %1413 = vmatprep.subr.bf16.mxu0 %v1554_v0 }
 0xd16   :  { %1414 = vmatpush3.bf16.msra.mxu0 %v1762_v53 }
 0xd17   :  { %1415 = vmatprep.subr.bf16.mxu0 %v1554_v0 }
 0xd1a   :  { %1416 = vmatpush3.bf16.msra.mxu0 %v1777_v56 }
 0xd1b   :  { %1421 = vmatprep.subr.bf16.mxu0 %v1554_v0 }
 0xde0   :  { %v572_v52 = vpop.f32.mrb[16].mxu0 }
 0xde1   :  { %v573_v54 = vadd.f32 %v572_v52, %v174_v47  ;;  %v1387_v55 = vpop.f32.mrb[17].mxu0 }
 0xde2   :  { %v575_v57 = vpop.f32.mrb[18].mxu0 }
 0xde3   :  { %v579_v58 = vmul.f32 %v573_v54, %v1683_v17  ;;  %v576_v50 = vadd.f32 %v1817_v5, %v575_v57  ;;  %v1388_v60 = vpop.f32.mrb[19].mxu0 }
 0xde5   :  { %1508 = vtanh.f32 %v579_v58  ;;  %v580_v53 = vmul.f32 %v576_v50, %v1683_v17 }
 0xde7   :  { %1510 = vtanh.f32 %v580_v53 }
 0xdef   :  { %v1509_v62 = vpop.eup %1508 }
 0xdf0   :  { %v583_v56 = vmul.f32 %v1509_v62, %v1683_v17 }
 0xdf1   :  { %v1511_v2 = vpop.eup %1510 }
 0xdf2   :  { %v585_v36 = vadd.f32 %v583_v56, %v1692_v26  ;;  %v584_v61 = vmul.f32 %v1511_v2, %v1683_v17 }
 0xdf4   :  { %589 = vrot.lane.b32.xlu0 %v585_v36, %s1557_s3  ;;  %v586_v39 = vadd.f32 %v584_v61, %v1692_v26  ;;  %v587_v7 = vmul.f32 %v585_v36, %v490_v25 }
 0xdf6   :  { %600 = vrot.lane.b32.xlu1 %v586_v39, %s1557_s3  ;;  %v598_v10 = vmul.f32 %v586_v39, %v501_v29 }
 0xe66   :  { %v590_v44 = vpop.permute.xlu0 %589 }
 0xe67   :  { %v592_v3 = vmul.f32 %v590_v44, %v585_v36 }
 0xe68   :  { %v601_v4 = vpop.permute.xlu1 %600 }
 0xe69   :  { %v603_v6 = vmul.f32 %v601_v4, %v586_v39  ;;  %594 = vrot.lane.b32.xlu0 %v592_v3, %s1558_s16 }
 0xe6b   :  { %605 = vrot.lane.b32.xlu1 %v603_v6, %s1558_s16 }
 0xedb   :  { %v595_v8 = vpop.permute.xlu0 %594 }
 0xedc   :  { %v597_v9 = vadd.f32 %v595_v8, %v587_v7 }
 0xedd   :  { %v606_v12 = vpop.permute.xlu1 %605 }
 0xede   :  { %1512 = vtanh.f32 %v597_v9  ;;  %v608_v13 = vadd.f32 %v606_v12, %v598_v10 }
 0xee0   :  { %1514 = vtanh.f32 %v608_v13 }
 0xee8   :  { %v1513_v15 = vpop.eup %1512 }
 0xee9   :  { %612 = vrot.lane.b32.xlu0 %v1513_v15, %s1557_s3 }
 0xeea   :  { %v1515_v59 = vpop.eup %1514 }
 0xeeb   :  { %617 = vrot.lane.b32.xlu1 %v1515_v59, %s1557_s3 }
 0xf5b   :  { %v613_v18 = vpop.permute.xlu0 %612 }
 0xf5c   :  { %v615_v19 = vmul.f32 %v613_v18, %v585_v36 }
 0xf5d   :  { %v618_v20 = vpop.permute.xlu1 %617 }
 0xf5e   :  { %v1993_v21 = vmul.f32 %v618_v20, %v586_v39  ;;  %632 = vrot.lane.b32.xlu0 %v615_v19, %s1558_s16 }
 0xf60   :  { %635 = vrot.lane.b32.xlu1 %v1993_v21, %s1557_s3 }
 0xfd0   :  { %v633_v22 = vpop.permute.xlu0 %632 }
 0xfd2   :  { %v636_v23 = vpop.permute.xlu1 %635 }
 0xfd3   :  { %v638_v24 = vsel %vm113_vm1, %v633_v22, %v636_v23 }
 0xfd4   :  { %v1473_v25 = vpack.i.bf16 %v638_v24, %v615_v19 }
 0xfd6   :  { %1474 = vrot.lane.b32.xlu0 %v1473_v25, %s1557_s3  ;;  %v1222_v25 = vld [vmem:[%s2168_s7] ss:$0 sm:$0xff] }
0x1048   :  { %v1475_v27 = vpop.permute.xlu0 %1474 }
0x1049   :  { %v1477_v28 = vunpack.i.h.bf16 %v1475_v27  ;;  %v1476_v29 = vunpack.i.l.bf16 %v1475_v27 }
0x104b   :  { %v630_v31 = vsel %vm113_vm1, 0.0, %v1476_v29 }
0x104c   :  { %v1219_v32 = vpack.c.bf16 %v1477_v28, %v630_v31 }
0x104e   :  { %1406 = vmatmul.mubr.msk.bf16.vlgmr.msra.gmra.mrb[8].mxu1 %vm1788_vm5, %v1219_v32 }
0x104f   :  { %1441 = vmatprep.mubr.msk.bf16.mxu1 %vm1555_vm0, %v1554_v0 }
0x1121   :  { %v679_v37 = vpop.f32.mrb[8].mxu1 }
0x1122   :  { %v680_v34 = vadd.f32 %v679_v37, %v177_v35  ;;  %v1407_v38 = vpop.f32.mrb[9].mxu1 }
0x1123   :  { %v682_v41 = vpop.f32.mrb[10].mxu1 }
0x1124   :  { %v686_v42 = vmul.f32 %v680_v34, %v1683_v17  ;;  %v683_v43 = vadd.f32 %v1817_v5, %v682_v41  ;;  %v1408_v45 = vpop.f32.mrb[11].mxu1 }
0x1126   :  { %1516 = vtanh.f32 %v686_v42  ;;  %v687_v46 = vmul.f32 %v683_v43, %v1683_v17 }
0x1128   :  { %1518 = vtanh.f32 %v687_v46 }
0x1130   :  { %v1517_v1 = vpop.eup %1516 }
0x1131   :  { %v690_v30 = vmul.f32 %v1517_v1, %v1683_v17 }
0x1132   :  { %v1519_v48 = vpop.eup %1518 }
0x1133   :  { %v692_v33 = vadd.f32 %v690_v30, %v1692_v26  ;;  %v691_v16 = vmul.f32 %v1519_v48, %v1683_v17 }
0x1135   :  { %696 = vrot.lane.b32.xlu1 %v692_v33, %s1557_s3  ;;  %v693_v63 = vadd.f32 %v691_v16, %v1692_v26  ;;  %v694_v57 = vmul.f32 %v692_v33, %v597_v9 }
0x1137   :  { %707 = vrot.lane.b32.xlu0 %v693_v63, %s1557_s3  ;;  %v705_v60 = vmul.f32 %v693_v63, %v608_v13 }
0x11a7   :  { %v697_v47 = vpop.permute.xlu1 %696 }
0x11a8   :  { %v699_v52 = vmul.f32 %v697_v47, %v692_v33 }
0x11a9   :  { %v708_v54 = vpop.permute.xlu0 %707 }
0x11aa   :  { %v710_v55 = vmul.f32 %v708_v54, %v693_v63  ;;  %701 = vrot.lane.b32.xlu1 %v699_v52, %s1558_s16  ;;  %v1560_v52 = vmov 0   ;;  %v1561_v54 = vmov 1966171168  }
0x11ab   :  { %1479 = vset.pattern.permute.xlu0 %v1560_v52  ;;  %1478 = vset.pattern.permute.xlu1 %v1560_v52 }
0x11ac   :  { %712 = vrot.lane.b32.xlu0 %v710_v55, %s1558_s16  ;;  %v822_v55 = vunpack.c.l.s4 %v1561_v54 }
0x121c   :  { %v702_v58 = vpop.permute.xlu1 %701 }
0x121d   :  { %v704_v50 = vadd.f32 %v702_v58, %v694_v57  ;;  %v823_v57 = vunpack.c.0.s8 %v822_v55 }
0x121e   :  { %v713_v53 = vpop.permute.xlu0 %712 }
0x121f   :  { %1520 = vtanh.f32 %v704_v50  ;;  %v715_v62 = vadd.f32 %v713_v53, %v705_v60  ;;  %v826_v58 = vsub.s32 %v823_v57, %v1671_v11  ;;  %v818_v50 = vld [vmem:[%s2169_s8] sm:$0x3f] }
0x1221   :  { %1522 = vtanh.f32 %v715_v62  ;;  %v827_v60 = vrot.slane %v818_v50, %v826_v58 }
0x1223   :  { %v835_v53 = vcombine.high %v827_v60, %v827_v60 }
0x1229   :  { %v1521_v56 = vpop.eup %1520 }
0x122a   :  { %719 = vrot.lane.b32.xlu1 %v1521_v56, %s1557_s3  ;;  %v857_v56 = vrot.slane %v835_v53, %v826_v58 }
0x122b   :  { %v1523_v2 = vpop.eup %1522 }
0x122c   :  { %724 = vrot.lane.b32.xlu0 %v1523_v2, %s1557_s3  ;;  %v904_v2 = vrot.slane %v857_v56, %v1675_v14 }
0x129c   :  { %v720_v36 = vpop.permute.xlu1 %719 }
0x129d   :  { %v722_v61 = vmul.f32 %v720_v36, %v692_v33 }
0x129e   :  { %v725_v39 = vpop.permute.xlu0 %724 }
0x129f   :  { %v727_v44 = vmul.f32 %v725_v39, %v693_v63  ;;  %734 = vrot.lane.b32.xlu1 %v722_v61, %s1558_s16 }
0x12a1   :  { %737 = vrot.lane.b32.xlu0 %v727_v44, %s1557_s3 }
0x1311   :  { %v735_v3 = vpop.permute.xlu1 %734 }
0x1313   :  { %v738_v4 = vpop.permute.xlu0 %737 }
0x1314   :  { %v740_v6 = vsel %vm113_vm1, %v735_v3, %v738_v4  ;;  %v820_v3 = vcombine.high %v818_v50, %v818_v50 }
0x1315   :  { %v741_v7 = vpack.c.bf16 %v740_v6, %v740_v6 }
0x1317   :  { %1418 = vmatmul.mubr.msk.bf16.vlgmr.msra.gmra.mrb[20].mxu0 %vm51_vm2, %v741_v7  ;;  %v866_v7 = vcombine.high %v857_v56, %v857_v56 }
0x1318   :  { %1425 = vmatprep.mubr.msk.bf16.mxu0 %vm1555_vm0, %v1554_v0 }
0x13ea   :  { %v779_v8 = vpop.f32.mrb[20].mxu0 }
0x13eb   :  { %v780_v9 = vadd.f32 %v1817_v5, %v779_v8  ;;  %v1419_v10 = vpop.f32.mrb[21].mxu0  ;;  %v834_v8 = vrot.slane %v820_v3, %v826_v58  ;;  %v1018_v3 = vld [vmem:[%s2170_s9] sm:$0xff] }
0x13ec   :  { %v782_v12 = vpop.f32.mrb[22].mxu0 }
0x13ed   :  { %v785_v13 = vmul.f32 %v780_v9, %v1683_v17  ;;  %v1420_v15 = vpop.f32.mrb[23].mxu0  ;;  %v912_v12 = vrot.slane %v866_v7, %v1675_v14  ;;  %v1021_v7 = vld [vmem:[%s2170_s9 + $0x18] sm:$0xff] }
0x13ef   :  { %1524 = vtanh.f32 %v785_v13  ;;  %v850_v13 = vrot.slane %v834_v8, %v826_v58 }
0x13f9   :  { %v1525_v59 = vpop.eup %1524 }
0x13fa   :  { %v787_v18 = vmul.f32 %v1525_v59, %v1683_v17 }
0x13fc   :  { %v788_v19 = vadd.f32 %v787_v18, %v1692_v26  ;;  %v916_v18 = vrot.slane %v850_v13, %v1675_v14 }
0x13fe   :  { %791 = vrot.lane.b32.xlu1 %v788_v19, %s1557_s3  ;;  %v789_v5 = vmul.f32 %v788_v19, %v715_v62  ;;  %v843_v62 = vrot.slane %v827_v60, %v826_v58 }
0x1400   :  { %v900_v39 = vrot.slane %v843_v62, %v1675_v14 }
0x1470   :  { %v792_v20 = vpop.permute.xlu1 %791 }
0x1471   :  { %v794_v22 = vmul.f32 %v792_v20, %v788_v19  ;;  %v836_v20 = vcombine.high %v834_v8, %v834_v8 }
0x1473   :  { %796 = vrot.lane.b32.xlu0 %v794_v22, %s1558_s16 }
0x1477   :  { %301 = vrot.lane.b32.xlu0 %v1854_v49, %s1558_s16 }
0x147b   :  { %515 = vrot.lane.b32.xlu0 %v1958_v40, %s1558_s16 }
0x147f   :  { %729 = vrot.lane.b32.xlu0 %v727_v44, %s1558_s16  ;;  %v865_v44 = vcombine.high %v843_v62, %v843_v62 }
0x1481   :  { %v908_v11 = vrot.slane %v865_v44, %v1675_v14 }
0x14e5   :  { %v797_v23 = vpop.permute.xlu0 %796 }
0x14e6   :  { %v799_v24 = vadd.f32 %v797_v23, %v789_v5 }
0x14e8   :  { %1526 = vtanh.f32 %v799_v24  ;;  %v864_v24 = vrot.slane %v836_v20, %v826_v58 }
0x14e9   :  { %v302_v17 = vpop.permute.xlu0 %301 }
0x14ea   :  { %304 = vst.msk [vmem:[#allocation2] sm:$0xff] %vm113_vm1, %v302_v17 }
0x14ed   :  { %v516_v26 = vpop.permute.xlu0 %515 }
0x14ee   :  { %518 = vst.msk [vmem:[#allocation2 + $0x10] sm:$0xff] %vm113_vm1, %v516_v26 }
0x14f1   :  { %v730_v49 = vpop.permute.xlu0 %729  ;;  %v2042_v27 = vld [vmem:[#allocation2] sm:$0xff] }
0x14f2   :  { %v1527_v40 = vpop.eup %1526  ;;  %732 = vst.msk [vmem:[#allocation2 + $0x20] sm:$0xff] %vm113_vm1, %v730_v49  ;;  %v873_v28 = vmul.f32 %v1222_v25, %v2042_v27  ;;  %v920_v49 = vrot.slane %v864_v24, %v1675_v14 }
0x14f3   :  { %802 = vrot.lane.b32.xlu1 %v1527_v40, %s1557_s3 }
0x14f4   :  { %v879_v29 = vsel %vm113_vm1, %v873_v28, 0.0 }
0x14f5   :  { %880 = vadd.xlane.f32.xlu0 %v879_v29  ;;  %v2048_v31 = vld [vmem:[#allocation2 + $0x10] sm:$0xff] }
0x14f6   :  { %v875_v32 = vmul.f32 %v1222_v25, %v2048_v31 }
0x14f7   :  { %408 = vrot.lane.b32.xlu1 %v1913_v51, %s1558_s16 }
0x14f8   :  { %v885_v35 = vsel %vm113_vm1, %v875_v32, 0.0 }
0x14f9   :  { %886 = vadd.xlane.f32.xlu0 %v885_v35  ;;  %v2066_v46 = vld [vmem:[#allocation2 + $0x20] sm:$0xff] }
0x14fa   :  { %v877_v30 = vmul.f32 %v1222_v25, %v2066_v46 }
0x14fb   :  { %622 = vrot.lane.b32.xlu1 %v1993_v21, %s1558_s16 }
0x14fc   :  { %v891_v48 = vsel %vm113_vm1, %v877_v30, 0.0 }
0x1565   :  { %v803_v37 = vpop.permute.xlu1 %802 }
0x1566   :  { %v805_v34 = vmul.f32 %v803_v37, %v788_v19 }
0x1568   :  { %807 = vrot.lane.b32.xlu1 %v805_v34, %s1558_s16 }
0x1569   :  { %v409_v38 = vpop.permute.xlu1 %408 }
0x156a   :  { %411 = vst.msk [vmem:[#allocation2 + $0x8] sm:$0xff] %vm113_vm1, %v409_v38 }
0x156d   :  { %v623_v41 = vpop.permute.xlu1 %622 }
0x156e   :  { %625 = vst.msk [vmem:[#allocation2 + $0x18] sm:$0xff] %vm113_vm1, %v623_v41 }
0x1571   :  { %v2063_v45 = vld [vmem:[#allocation2 + $0x8] sm:$0xff] }
0x1572   :  { %v874_v21 = vmul.f32 %v1222_v25, %v2063_v45 }
0x1574   :  { %v882_v1 = vsel %vm113_vm1, %v874_v21, 0.0 }
0x1575   :  { %v2059_v42 = vld [vmem:[#allocation2 + $0x18] sm:$0xff] }
0x1576   :  { %v876_v51 = vmul.f32 %v1222_v25, %v2059_v42 }
0x1578   :  { %v888_v43 = vsel %vm113_vm1, %v876_v51, 0.0 }
0x1579   :  { %889 = vadd.xlane.f32.xlu0 %v888_v43 }
0x1582   :  { %v881_v36 = vpop.xlane.xlu0 %880 }
0x1583   :  { %v927_v6 = vadd.f32 %v900_v39, %v881_v36 }
0x1586   :  { %v887_v9 = vpop.xlane.xlu0 %886 }
0x1587   :  { %v929_v10 = vadd.f32 %v908_v11, %v887_v9  ;;  %v1020_v11 = vld [vmem:[%s2170_s9 + $0x10] sm:$0xff] }
0x1588   :  { %v1025_v8 = vpack.c.bf16 %v1021_v7, %v1020_v11 }
0x158c   :  { %883 = vadd.xlane.f32.xlu1 %v882_v1 }
0x1590   :  { %892 = vadd.xlane.f32.xlu1 %v891_v48 }
0x15da   :  { %v808_v33 = vpop.permute.xlu1 %807 }
0x15db   :  { %810 = vst.msk [vmem:[#allocation2 + $0x28] sm:$0xff] %vm113_vm1, %v808_v33 }
0x15e2   :  { %v2072_v16 = vld [vmem:[#allocation2 + $0x28] sm:$0xff] }
0x15e3   :  { %v878_v63 = vmul.f32 %v1222_v25, %v2072_v16 }
0x15e5   :  { %v894_v47 = vsel %vm113_vm1, %v878_v63, 0.0 }
0x15e6   :  { %895 = vadd.xlane.f32.xlu0 %v894_v47 }
0x1606   :  { %v890_v15 = vpop.xlane.xlu0 %889 }
0x1607   :  { %v930_v59 = vadd.f32 %v912_v12, %v890_v15 }
0x1619   :  { %v884_v61 = vpop.xlane.xlu1 %883 }
0x161a   :  { %v928_v4 = vadd.f32 %v904_v2, %v884_v61 }
0x161c   :  { %1528 = vtanh.f32 %v928_v4  ;;  %v1019_v4 = vld [vmem:[%s2170_s9 + $0x8] sm:$0xff] }
0x161d   :  { %1530 = vtanh.f32 %v927_v6  ;;  %v893_v19 = vpop.xlane.xlu1 %892  ;;  %v1024_v6 = vpack.c.bf16 %v1019_v4, %v1018_v3 }
0x161e   :  { %1532 = vtanh.f32 %v929_v10  ;;  %v931_v5 = vadd.f32 %v916_v18, %v893_v19 }
0x161f   :  { %1534 = vtanh.f32 %v930_v59  ;;  %1422 = vmatpush3.bf16.msra.mxu0 %v1024_v6 }
0x1620   :  { %1536 = vtanh.f32 %v931_v5  ;;  %1423 = vmatprep.subr.bf16.mxu0 %v1554_v0 }
0x1623   :  { %1424 = vmatpush3.bf16.msra.mxu0 %v1025_v8 }
0x1624   :  { %1429 = vmatprep.subr.bf16.mxu0 %v1554_v0 }
0x1626   :  { %v1529_v22 = vpop.eup %1528 }
0x1627   :  { %v1531_v23 = vpop.eup %1530  ;;  %v941_v17 = vmul.f32 1.442695, %v1529_v22 }
0x1628   :  { %v939_v26 = vmul.f32 1.442695, %v1531_v23  ;;  %v1533_v25 = vpop.eup %1532 }
0x1629   :  { %1538 = vpow2.f32 %v941_v17  ;;  %v943_v40 = vmul.f32 1.442695, %v1533_v25  ;;  %v1535_v29 = vpop.eup %1534 }
0x162a   :  { %1540 = vpow2.f32 %v939_v26  ;;  %v945_v35 = vmul.f32 1.442695, %v1535_v29  ;;  %v1537_v37 = vpop.eup %1536 }
0x162b   :  { %v947_v38 = vmul.f32 1.442695, %v1537_v37  ;;  %v1079_v37 = vld [vmem:[%s2171_s11 + $0x18] sm:$0xff] }
0x1633   :  { %v1539_v34 = vpop.eup %1538 }
0x1634   :  { %v1541_v41 = vpop.eup %1540  ;;  %v953_v51 = vsel %vm951_vm6, %v1539_v34, 0.0 }
0x1635   :  { %v952_v14 = vsel %vm951_vm6, %v1541_v41, 0.0 }
0x1636   :  { %v954_v1 = vadd.f32 %v953_v51, %v952_v14 }
0x1673   :  { %v896_v28 = vpop.xlane.xlu0 %895 }
0x1674   :  { %v932_v32 = vadd.f32 %v920_v49, %v896_v28  ;;  %v1077_v28 = vld [vmem:[%s2171_s11 + $0x8] sm:$0xff] }
0x1676   :  { %1542 = vtanh.f32 %v932_v32 }
0x1677   :  { %1544 = vpow2.f32 %v943_v40 }
0x1678   :  { %1546 = vpow2.f32 %v945_v35 }
0x1679   :  { %1548 = vpow2.f32 %v947_v38  ;;  %v1134_v38 = vld [vmem:[%s2172_s13] sm:$0xff] }
0x1680   :  { %v1543_v43 = vpop.eup %1542 }
0x1681   :  { %v1545_v21 = vpop.eup %1544  ;;  %v949_v30 = vmul.f32 1.442695, %v1543_v43  ;;  %v1223_v43 = vld [vmem:[%s2173_s10] ss:$0 sm:$0xff] }
0x1682   :  { %v955_v48 = vsel %vm951_vm6, %v1545_v21, 0.0  ;;  %v1547_v33 = vpop.eup %1546 }
0x1683   :  { %1550 = vpow2.f32 %v949_v30  ;;  %v956_v63 = vadd.f32 %v955_v48, %v954_v1  ;;  %v957_v47 = vsel %vm951_vm6, %v1547_v33, 0.0  ;;  %v1549_v52 = vpop.eup %1548 }
0x1684   :  { %v959_v55 = vsel %vm951_vm6, %v1549_v52, 0.0 }
0x1685   :  { %v958_v54 = vadd.f32 %v957_v47, %v956_v63  ;;  %v1136_v47 = vld [vmem:[%s2172_s13 + $0x10] sm:$0xff] }
0x1687   :  { %v960_v58 = vadd.f32 %v959_v55, %v958_v54  ;;  %v1225_v54 = vld [vmem:[%s2174_s12] ss:$0 sm:$0xff] }
0x168d   :  { %v1551_v57 = vpop.eup %1550 }
0x168e   :  { %v961_v50 = vsel %vm951_vm6, %v1551_v57, 0.0 }
0x168f   :  { %v962_v60 = vadd.f32 %v961_v50, %v960_v58 }
0x1691   :  { %v963_v53 = vadd.f32 1e-10, %v962_v60 }
0x1693   :  { %1552 = vrcp.f32 %v963_v53 }
0x169d   :  { %v1553_v62 = vpop.eup %1552 }
0x169e   :  { %v966_v56 = vmul.f32 %v1553_v62, %v1539_v34  ;;  %v965_v2 = vmul.f32 %v1553_v62, %v1541_v41  ;;  %v967_v36 = vmul.f32 %v1553_v62, %v1545_v21  ;;  %v968_v61 = vmul.f32 %v1553_v62, %v1547_v33  ;;  %v1135_v41 = vld [vmem:[%s2172_s13 + $0x8] sm:$0xff] }
0x169f   :  { %v969_v39 = vmul.f32 %v1553_v62, %v1549_v52  ;;  %v970_v44 = vmul.f32 %v1553_v62, %v1551_v57  ;;  %v1140_v51 = vpack.c.bf16 %v1135_v41, %v1134_v38 }
0x16a0   :  { %978 = vperm.xlu0 %1479, %v966_v56   ;;  %973 = vperm.xlu1 %1478, %v965_v2   ;;  %v1227_v56 = vld [vmem:[%s2175_s14] ss:$0 sm:$0xff] }
0x16a1   :  { %1438 = vmatpush3.bf16.msra.mxu1 %v1140_v51 }
0x16a2   :  { %1439 = vmatprep.subr.bf16.mxu1 %v1554_v0 }
0x16a4   :  { %983 = vperm.xlu1 %1478, %v967_v36  }
0x16a8   :  { %988 = vperm.xlu1 %1478, %v968_v61  }
0x16ac   :  { %993 = vperm.xlu1 %1478, %v969_v39  }
0x16b0   :  { %998 = vperm.xlu1 %1478, %v970_v44  }
0x171f   :  { %v974_v9 = vpop.permute.xlu1 %973  ;;  %v979_v10 = vpop.permute.xlu0 %978 }
0x1720   :  { %v1002_v13 = vmul.f32 %v979_v10, %v2063_v45  ;;  %v1001_v15 = vmul.f32 %v974_v9, %v2042_v27 }
0x1722   :  { %v1008_v19 = vsel %vm113_vm1, %v1002_v13, 0.0  ;;  %v1007_v20 = vsel %vm113_vm1, %v1001_v15, 0.0 }
0x1723   :  { %v984_v12 = vpop.permute.xlu1 %983  ;;  %v1009_v23 = vadd.f32 %v1008_v19, %v1007_v20 }
0x1724   :  { %v1003_v59 = vmul.f32 %v984_v12, %v2048_v31 }
0x1726   :  { %v1010_v5 = vsel %vm113_vm1, %v1003_v59, 0.0 }
0x1727   :  { %v989_v18 = vpop.permute.xlu1 %988  ;;  %v1011_v45 = vadd.f32 %v1010_v5, %v1009_v23 }
0x1728   :  { %v1004_v22 = vmul.f32 %v989_v18, %v2059_v42  ;;  %v1076_v42 = vld [vmem:[%s2171_s11] sm:$0xff] }
0x172a   :  { %v1012_v17 = vsel %vm113_vm1, %v1004_v22, 0.0 }
0x172b   :  { %v994_v24 = vpop.permute.xlu1 %993  ;;  %v1013_v25 = vadd.f32 %v1012_v17, %v1011_v45 }
0x172c   :  { %v1005_v26 = vmul.f32 %v994_v24, %v2066_v46  ;;  %v1082_v46 = vpack.c.bf16 %v1077_v28, %v1076_v42 }
0x172e   :  { %v1014_v27 = vsel %vm113_vm1, %v1005_v26, 0.0 }
0x172f   :  { %v999_v31 = vpop.permute.xlu1 %998  ;;  %v1015_v40 = vadd.f32 %v1014_v27, %v1013_v25 }
0x1730   :  { %v1006_v49 = vmul.f32 %v999_v31, %v2072_v16  ;;  %v1078_v16 = vld [vmem:[%s2171_s11 + $0x10] sm:$0xff] }
0x1731   :  { %v1083_v34 = vpack.c.bf16 %v1079_v37, %v1078_v16 }
0x1732   :  { %v1016_v29 = vsel %vm113_vm1, %v1006_v49, 0.0 }
0x1733   :  { %v1017_v32 = vadd.f32 %v1016_v29, %v1015_v40 }
0x1735   :  { %v1023_v35 = vpack.c.bf16 %v1017_v32, %v1017_v32 }
0x1737   :  { %1426 = vmatmul.mubr.msk.bf16.vlgmr.msra.gmra.mrb[24].mxu0 %vm113_vm1, %v1023_v35 }
0x1738   :  { %1430 = vmatpush3.bf16.msra.mxu0 %v1082_v46  ;;  %1433 = vmatprep.mubr.msk.bf16.mxu0 %vm1555_vm0, %v1554_v0 }
0x1739   :  { %1431 = vmatprep.subr.bf16.mxu0 %v1554_v0  ;;  %v1137_v0 = vld [vmem:[%s2172_s13 + $0x18] sm:$0xff] }
0x173a   :  { %v1141_v52 = vpack.c.bf16 %v1137_v0, %v1136_v47 }
0x173c   :  { %1432 = vmatpush3.bf16.msra.mxu0 %v1083_v34  ;;  %1440 = vmatpush3.bf16.msra.mxu1 %v1141_v52 }
0x180a   :  { %v1069_v14 = vpop.f32.mrb[24].mxu0 }
0x180b   :  { %v1070_v21 = vadd.f32 %v1223_v43, %v1069_v14  ;;  %v1427_v1 = vpop.f32.mrb[25].mxu0 }
0x180c   :  { %v1072_v30 = vpop.f32.mrb[26].mxu0 }
0x180d   :  { %v1075_v48 = vmax.f32 %v1070_v21, 0.0  ;;  %v1428_v33 = vpop.f32.mrb[27].mxu0 }
0x180f   :  { %v1081_v63 = vpack.c.bf16 %v1075_v48, %v1075_v48 }
0x1811   :  { %1434 = vmatmul.mubr.msk.bf16.vlgmr.msra.gmra.mrb[28].mxu0 %vm113_vm1, %v1081_v63 }
0x18e4   :  { %v1127_v55 = vpop.f32.mrb[28].mxu0 }
0x18e5   :  { %v1128_v57 = vadd.f32 %v1225_v54, %v1127_v55  ;;  %v1435_v58 = vpop.f32.mrb[29].mxu0 }
0x18e6   :  { %v1130_v50 = vpop.f32.mrb[30].mxu0 }
0x18e7   :  { %v1133_v60 = vmax.f32 %v1128_v57, 0.0  ;;  %v1436_v53 = vpop.f32.mrb[31].mxu0 }
0x18e9   :  { %v1139_v62 = vpack.c.bf16 %v1133_v60, %v1133_v60 }
0x18eb   :  { %1442 = vmatmul.mubr.msk.bf16.vlgmr.msra.gmra.mrb[12].mxu1 %vm113_vm1, %v1139_v62 }
0x19be   :  { %v1185_v2 = vpop.f32.mrb[12].mxu1 }
0x19bf   :  { %v1186_v36 = vadd.f32 %v1227_v56, %v1185_v2  ;;  %v1443_v61 = vpop.f32.mrb[13].mxu1 }
0x19c0   :  { %v1188_v39 = vpop.f32.mrb[14].mxu1 }
0x19c1   :  { %1191 = vst [vmem:[%s2176_s15] sm:$0xff] %v1186_v36  ;;  %v1444_v44 = vpop.f32.mrb[15].mxu1 }

</bundles_post_ra>
